<compile_context>
chip_gen: v5e
topology: v5e:2x2
jax: 0.10.0
libtpu: 0.0.40
codegen_flags: <defaults>
</compile_context>

<pallas_src>
import functools

import jax
import jax.numpy as jnp
from jax.experimental import pallas as pl
from jax.experimental.pallas import tpu as pltpu

_VMEM_LIMIT = 32 * 1024 * 1024  # plenty for these tiles, within every chip's budget


# ---------------------------------------------------------------------------
# Kernels
# ---------------------------------------------------------------------------

def _xw_kernel(x_ref, w_ref, o_ref):
    """XW row block: o_i = X_i @ W' (bf16 MXU inputs, f32 accumulation, bf16 out)."""
    o_ref[...] = jnp.dot(x_ref[...], w_ref[...],
                         preferred_element_type=jnp.float32).astype(o_ref.dtype)


def _gcn_agg_kernel(a_ref, xw_ref, b_ref, wnext_ref, o_ref, acc_ref):
    """One GCN layer fused with the NEXT layer's feature transform.

    Grid = (row blocks of A, K blocks over A columns).
      acc += A_ik @ XW_k                                  (per step, MXU)
      epilogue: H_i   = relu(acc + b')                    (f32 VPU)
                o_i   = (H_i).bf16 @ W_next'              (once per row block)
    """
    k = pl.program_id(1)

    @pl.when(k == 0)
    def _():
        acc_ref[...] = jnp.zeros_like(acc_ref)

    acc_ref[...] += jnp.dot(a_ref[...], xw_ref[...],
                            preferred_element_type=jnp.float32)

    @pl.when(k == pl.num_programs(1) - 1)
    def _():
        h = jnp.maximum(acc_ref[...] + b_ref[...], 0.0)        # f32 bias + ReLU
        o_ref[...] = jnp.dot(h.astype(jnp.bfloat16), wnext_ref[...],
                             preferred_element_type=jnp.float32).astype(o_ref.dtype)


def _gcn_final_kernel(a_ref, xw3_ref, b3_ref, wfc_ref, bfc_ref, wout_ref, bout_ref,
                      o_ref, acc_ref):
    """Layer 3 aggregation + fc -> relu -> out -> log_softmax, fused in the K epilogue."""
    k = pl.program_id(1)

    @pl.when(k == 0)
    def _():
        acc_ref[...] = jnp.zeros_like(acc_ref)

    acc_ref[...] += jnp.dot(a_ref[...], xw3_ref[...],
                            preferred_element_type=jnp.float32)

    @pl.when(k == pl.num_programs(1) - 1)
    def _():
        h3 = jnp.maximum(acc_ref[...] + b3_ref[...], 0.0)
        hf = jnp.dot(h3.astype(jnp.bfloat16), wfc_ref[...],
                     preferred_element_type=jnp.float32) + bfc_ref[...]
        hf = jnp.maximum(hf, 0.0)
        logits = jnp.dot(hf.astype(jnp.bfloat16), wout_ref[...],
                         preferred_element_type=jnp.float32) + bout_ref[...]

        # log_softmax over the lane-dense (padded) class axis; padded logits are
        # -1e30 (via bout padding + zero wout columns) so they contribute 0 to the sum.
        zmax = jnp.max(logits, axis=-1, keepdims=True)
        z = logits - zmax
        lse = jnp.log(jnp.sum(jnp.exp(z), axis=-1, keepdims=True))
        o_ref[...] = z - lse


# ---------------------------------------------------------------------------
# pallas_call wrappers
# ---------------------------------------------------------------------------

def _round_up(x, m):
    return ((x + m - 1) // m) * m


def _pad2(a, r, c):
    return jnp.pad(a, ((0, r - a.shape[0]), (0, c - a.shape[1])))


def _pick_tile(n):
    """Adaptive A tile: bigger tiles amortize per-step overhead (HBM-bound stream),
    while keeping >=2 row blocks for graphs >= 512 nodes (v7x dual-TC sharding)."""
    if n >= 1024:
        bm = 512
    elif n >= 512:
        bm = 256
    else:
        bm = 128
    n_pad = _round_up(max(n, bm), bm)
    return n_pad, bm


def _xw(x_p, w, *, bm):
    n, cin = x_p.shape
    cout = w.shape[1]
    return pl.pallas_call(
        _xw_kernel,
        out_shape=jax.ShapeDtypeStruct((n, cout), jnp.bfloat16),
        grid_spec=pltpu.PrefetchScalarGridSpec(
            num_scalar_prefetch=0,
            grid=(n // bm,),
            in_specs=[
                pl.BlockSpec((bm, cin), lambda i: (i, 0)),
                pl.BlockSpec((cin, cout), lambda i: (0, 0)),
            ],
            out_specs=pl.BlockSpec((bm, cout), lambda i: (i, 0)),
        ),
        compiler_params=pltpu.CompilerParams(
            dimension_semantics=("parallel",),
            vmem_limit_bytes=_VMEM_LIMIT),
    )(x_p, w)


def _gcn_agg(a_p, xw, b, w_next, *, bm, bk):
    n = a_p.shape[0]
    cin = xw.shape[1]
    cout = w_next.shape[1]
    grid = (n // bm, n // bk)
    return pl.pallas_call(
        _gcn_agg_kernel,
        out_shape=jax.ShapeDtypeStruct((n, cout), jnp.bfloat16),
        grid_spec=pltpu.PrefetchScalarGridSpec(
            num_scalar_prefetch=0,
            grid=grid,
            in_specs=[
                pl.BlockSpec((bm, bk), lambda i, k: (i, k)),      # A row/col block
                pl.BlockSpec((bk, cin), lambda i, k: (k, 0)),     # XW rows for this K block
                pl.BlockSpec((1, cin), lambda i, k: (0, 0)),      # folded bias (resident)
                pl.BlockSpec((cin, cout), lambda i, k: (0, 0)),   # next layer's folded W
            ],
            out_specs=pl.BlockSpec((bm, cout), lambda i, k: (i, 0)),
            scratch_shapes=[pltpu.VMEM((bm, cin), jnp.float32)],
        ),
        compiler_params=pltpu.CompilerParams(
            dimension_semantics=("parallel", "arbitrary"),
            vmem_limit_bytes=_VMEM_LIMIT),
    )(a_p, xw, b, w_next)


def _gcn_final(a_p, xw3, b3, wfc, bfc, wout, bout, *, bm, bk,
               hid_pad, half_pad, out_pad):
    n = a_p.shape[0]
    grid = (n // bm, n // bk)
    return pl.pallas_call(
        _gcn_final_kernel,
        out_shape=jax.ShapeDtypeStruct((n, out_pad), jnp.float32),
        grid_spec=pltpu.PrefetchScalarGridSpec(
            num_scalar_prefetch=0,
            grid=grid,
            in_specs=[
                pl.BlockSpec((bm, bk), lambda i, k: (i, k)),               # A block
                pl.BlockSpec((bk, hid_pad), lambda i, k: (k, 0)),          # XW3 block
                pl.BlockSpec((1, hid_pad), lambda i, k: (0, 0)),           # b3'
                pl.BlockSpec((hid_pad, half_pad), lambda i, k: (0, 0)),    # Wfc
                pl.BlockSpec((1, half_pad), lambda i, k: (0, 0)),          # bfc
                pl.BlockSpec((half_pad, out_pad), lambda i, k: (0, 0)),    # Wout
                pl.BlockSpec((1, out_pad), lambda i, k: (0, 0)),           # bout (-1e30 pad)
            ],
            out_specs=pl.BlockSpec((bm, out_pad), lambda i, k: (i, 0)),
            scratch_shapes=[pltpu.VMEM((bm, hid_pad), jnp.float32)],
        ),
        compiler_params=pltpu.CompilerParams(
            dimension_semantics=("parallel", "arbitrary"),
            vmem_limit_bytes=_VMEM_LIMIT),
    )(a_p, xw3, b3, wfc, bfc, wout, bout)


def _gcn_forward_impl(a_hat, x, params):
    """Full eval-mode GCN forward.  Returns log-probs of shape [N, output_dim]."""
    eps = 1e-5
    n, in_dim = x.shape
    out_dim = params["wout"].shape[1]

    n_pad, bm = _pick_tile(n)
    bk = bm
    in_pad = _round_up(in_dim, 128)
    hid_pad = _round_up(params["w1"].shape[1], 128)
    half_pad = _round_up(params["wfc"].shape[1], 128)
    out_pad = _round_up(out_dim, 128)

    # --- Fold eval-mode BatchNorm (+ conv bias) into the weights -------------
    def fold(i):
        scale = params[f"g{i}"] * jax.lax.rsqrt(params[f"v{i}"] + eps)   # (1, fo)
        w = params[f"w{i}"] * scale                                      # column scale
        b = (params[f"b{i}"] - params[f"m{i}"]) * scale + params[f"be{i}"]
        return w, b

    w1, b1 = fold(1)
    w2, b2 = fold(2)
    w3, b3 = fold(3)

    # --- Pad to lane/sublane grid, cast matmul operands to bf16 --------------
    a_p = _pad2(a_hat, n_pad, n_pad).astype(jnp.bfloat16)
    x_p = _pad2(x, n_pad, in_pad).astype(jnp.bfloat16)
    w1_p = _pad2(w1, in_pad, hid_pad).astype(jnp.bfloat16)
    w2_p = _pad2(w2, hid_pad, hid_pad).astype(jnp.bfloat16)
    w3_p = _pad2(w3, hid_pad, hid_pad).astype(jnp.bfloat16)
    wfc_p = _pad2(params["wfc"], hid_pad, half_pad).astype(jnp.bfloat16)
    wout_p = _pad2(params["wout"], half_pad, out_pad).astype(jnp.bfloat16)

    b1_p = _pad2(b1, 1, hid_pad)                       # f32 biases, zero-padded lanes
    b2_p = _pad2(b2, 1, hid_pad)
    b3_p = _pad2(b3, 1, hid_pad)
    bfc_p = _pad2(params["bfc"], 1, half_pad)
    # Padded output lanes get -1e30 so they vanish under the softmax
    # (valid because padded columns of wout are exactly zero).
    bout_p = jnp.full((1, out_pad), -1e30, jnp.float32)
    bout_p = bout_p.at[:, :out_dim].set(params["bout"])

    # --- 4 pallas_calls: XW1, layer1(+XW2), layer2(+XW3), layer3+head --------
    xw1 = _xw(x_p, w1_p, bm=bm)
    xw2 = _gcn_agg(a_p, xw1, b1_p, w2_p, bm=bm, bk=bk)
    xw3 = _gcn_agg(a_p, xw2, b2_p, w3_p, bm=bm, bk=bk)
    out = _gcn_final(a_p, xw3, b3_p, wfc_p, bfc_p, wout_p, bout_p, bm=bm, bk=bk,
                     hid_pad=hid_pad, half_pad=half_pad, out_pad=out_pad)
    return out[:n, :out_dim]


gcn_forward = jax.jit(_gcn_forward_impl)


# ---------------------------------------------------------------------------
# Graph / parameter construction (glue JAX) and reference
# ---------------------------------------------------------------------------

def normalized_adjacency(edge_index, num_nodes):
    """Dense D^{-1/2}(A + I)D^{-1/2} from edge_index [2, E]."""
    src, dst = edge_index[0], edge_index[1]
    a = jnp.zeros((num_nodes, num_nodes), jnp.float32)
    a = a.at[dst, src].set(1.0)                      # messages flow src -> dst
    a = a + jnp.eye(num_nodes, dtype=jnp.float32)    # self-loops
    deg = jnp.sum(a, axis=1)
    dinv = jax.lax.rsqrt(jnp.maximum(deg, 1e-12))
    return a * dinv[:, None] * dinv[None, :]


def init_params(key, input_dim, hidden_dim, output_dim):
    ks = jax.random.split(key, 12)
    p = {}

    def dense(k, fan_in, fan_out):
        return (jax.random.normal(k, (fan_in, fan_out), jnp.float32)
                * (1.0 / jnp.sqrt(fan_in)))

    dims = [(input_dim, hidden_dim), (hidden_dim, hidden_dim), (hidden_dim, hidden_dim)]
    for i, (fi, fo) in enumerate(dims, start=1):
        p[f"w{i}"] = dense(ks[2 * i - 2], fi, fo)
        p[f"b{i}"] = jnp.zeros((1, fo), jnp.float32)
        p[f"g{i}"] = jnp.ones((1, fo), jnp.float32)
        p[f"be{i}"] = jnp.zeros((1, fo), jnp.float32)
        p[f"m{i}"] = jnp.zeros((1, fo), jnp.float32)
        p[f"v{i}"] = jnp.ones((1, fo), jnp.float32)

    half = hidden_dim // 2
    p["wfc"] = dense(ks[6], hidden_dim, half)
    p["bfc"] = jax.random.normal(ks[7], (1, half), jnp.float32) * 0.01
    p["wout"] = dense(ks[8], half, output_dim)
    p["bout"] = jax.random.normal(ks[9], (1, output_dim), jnp.float32) * 0.01
    return p


def gcn_reference(a_hat, x, params):
    """Pure-JAX f32 eval-mode reference (BN with running stats, dropout = identity)."""
    eps = 1e-5
    h = x
    for i in (1, 2, 3):
        h = a_hat @ (h @ params[f"w{i}"]) + params[f"b{i}"]
        h = ((h - params[f"m{i}"]) * jax.lax.rsqrt(params[f"v{i}"] + eps)
             * params[f"g{i}"] + params[f"be{i}"])
        h = jnp.maximum(h, 0.0)
    h = jnp.maximum(h @ params["wfc"] + params["bfc"], 0.0)
    logits = h @ params["wout"] + params["bout"]
    return jax.nn.log_softmax(logits, axis=1)


if __name__ == "__main__":
    key = jax.random.PRNGKey(0)
    k_param, k_x = jax.random.split(key)

    # Small graph: 16 nodes, input_dim=8, hidden_dim=32, output_dim=4
    num_nodes, input_dim, hidden_dim, output_dim = 16, 8, 32, 4

    x = jax.random.normal(k_x, (num_nodes, input_dim), jnp.float32)

    # Deterministic undirected edge set: ring + a few chords (both directions)
    src = list(range(num_nodes)) + [0, 3, 5, 7]
    dst = [(i + 1) % num_nodes for i in range(num_nodes)] + [8, 11, 13, 15]
    src_b = src + dst
    dst_b = dst + src
    edge_index = jnp.array([src_b, dst_b], dtype=jnp.int32)   # [2, E]

    a_hat = normalized_adjacency(edge_index, num_nodes)
    params = init_params(k_param, input_dim, hidden_dim, output_dim)

    out = gcn_forward(a_hat, x, params)
    out = jax.block_until_ready(out)

    assert out.shape == (num_nodes, output_dim)
    # log_softmax rows should (log-)sum to ~0
    row_lse = jax.nn.logsumexp(out, axis=1)
    assert jnp.max(jnp.abs(row_lse)) < 1e-4
    # Loose check against the f32 reference (bf16 MXU inputs -> small drift)
    ref = gcn_reference(a_hat, x, params)
    assert jnp.max(jnp.abs(out - ref)) < 2e-1

    print("KERNEL_OK")
</pallas_src>

<mosaic_0001>
module attributes {stable_mosaic.version = 11 : i64} {
  func.func @_xw_kernel(%arg0: i32, %arg1: memref<128x128xbf16, #tpu.memory_space<vmem>>, %arg2: memref<128x128xbf16, #tpu.memory_space<vmem>>, %arg3: memref<128x128xbf16, #tpu.memory_space<vmem>>) attributes {dimension_semantics = [#tpu.dimension_semantics<parallel>], iteration_bounds = array<i64: 1>, scalar_prefetch = 0 : i64, scratch_operands = 0 : i64, tpu.core_type = #tpu.core_type<tc>, window_params = [{transform_indices = @transform_0, window_bounds = array<i64: 128, 128>}, {pipeline_mode = #tpu.pipeline_mode<synchronous>, transform_indices = @transform_1, window_bounds = array<i64: 128, 128>}, {transform_indices = @transform_2, window_bounds = array<i64: 128, 128>}]} {
    %c0 = arith.constant 0 : index
    %c0_0 = arith.constant 0 : index
    %0 = vector.load %arg1[%c0, %c0_0] : memref<128x128xbf16, #tpu.memory_space<vmem>>, vector<128x128xbf16>
    %c0_1 = arith.constant 0 : index
    %c0_2 = arith.constant 0 : index
    %1 = vector.load %arg2[%c0_1, %c0_2] : memref<128x128xbf16, #tpu.memory_space<vmem>>, vector<128x128xbf16>
    %cst = arith.constant dense<0.000000e+00> : vector<128x128xf32>
    %2 = tpu.matmul %0, %1, %cst {dimension_numbers = #tpu.dot_dimension_numbers<[1], [0], [0], [1], [0, 0, 1, 1], [], []>} : vector<128x128xbf16>, vector<128x128xbf16>, vector<128x128xf32> -> vector<128x128xf32>
    %3 = arith.truncf %2 : vector<128x128xf32> to vector<128x128xbf16>
    %c0_3 = arith.constant 0 : index
    %c0_4 = arith.constant 0 : index
    %4 = vector.load %arg3[%c0_3, %c0_4] : memref<128x128xbf16, #tpu.memory_space<vmem>>, vector<128x128xbf16>
    tpu.vector_store %arg3[%c0_3, %c0_4], %3 {strides = array<i32>} : memref<128x128xbf16, #tpu.memory_space<vmem>>, vector<128x128xbf16>,
    return
  }
  func.func @transform_0(%arg0: i32) -> (i32, i32) {
    %c0_i32 = arith.constant 0 : i32
    %c0_i32_0 = arith.constant 0 : i32
    return %arg0, %c0_i32 : i32, i32
  }
  func.func @transform_1(%arg0: i32) -> (i32, i32) {
    %c0_i32 = arith.constant 0 : i32
    %c0_i32_0 = arith.constant 0 : i32
    %c0_i32_1 = arith.constant 0 : i32
    return %c0_i32, %c0_i32_0 : i32, i32
  }
  func.func @transform_2(%arg0: i32) -> (i32, i32) {
    %c0_i32 = arith.constant 0 : i32
    %c0_i32_0 = arith.constant 0 : i32
    return %arg0, %c0_i32 : i32, i32
  }
}

module attributes {stable_mosaic.version = 11 : i64} {
  func.func @_gcn_agg_kernel(%arg0: i32, %arg1: i32, %arg2: memref<128x128xbf16, #tpu.memory_space<vmem>>, %arg3: memref<128x128xbf16, #tpu.memory_space<vmem>>, %arg4: memref<1x128xf32, #tpu.memory_space<vmem>>, %arg5: memref<128x128xbf16, #tpu.memory_space<vmem>>, %arg6: memref<128x128xbf16, #tpu.memory_space<vmem>>, %arg7: memref<128x128xf32, #tpu.memory_space<vmem>>) attributes {dimension_semantics = [#tpu.dimension_semantics<parallel>, #tpu.dimension_semantics<arbitrary>], iteration_bounds = array<i64: 1, 1>, scalar_prefetch = 0 : i64, scratch_operands = 1 : i64, tpu.core_type = #tpu.core_type<tc>, window_params = [{transform_indices = @transform_0, window_bounds = array<i64: 128, 128>}, {transform_indices = @transform_1, window_bounds = array<i64: 128, 128>}, {pipeline_mode = #tpu.pipeline_mode<synchronous>, transform_indices = @transform_2, window_bounds = array<i64: 1, 128>}, {pipeline_mode = #tpu.pipeline_mode<synchronous>, transform_indices = @transform_3, window_bounds = array<i64: 128, 128>}, {transform_indices = @transform_4, window_bounds = array<i64: 128, 128>}]} {
    %c0_i32 = arith.constant 0 : i32
    %0 = arith.cmpi eq, %arg1, %c0_i32 : i32
    %1 = arith.extui %0 : i1 to i32
    %c0_i32_0 = arith.constant 0 : i32
    %2 = arith.cmpi ne, %1, %c0_i32_0 : i32
    scf.if %2 {
      %cst_10 = arith.constant 0.000000e+00 : f32
      %12 = vector.broadcast %cst_10 : f32 to vector<128x128xf32>
      %c0_11 = arith.constant 0 : index
      %c0_12 = arith.constant 0 : index
      %13 = vector.load %arg7[%c0_11, %c0_12] : memref<128x128xf32, #tpu.memory_space<vmem>>, vector<128x128xf32>
      tpu.vector_store %arg7[%c0_11, %c0_12], %12 {strides = array<i32>} : memref<128x128xf32, #tpu.memory_space<vmem>>, vector<128x128xf32>,
    } else {
    }
    %c0 = arith.constant 0 : index
    %c0_1 = arith.constant 0 : index
    %3 = vector.load %arg7[%c0, %c0_1] : memref<128x128xf32, #tpu.memory_space<vmem>>, vector<128x128xf32>
    %c0_2 = arith.constant 0 : index
    %c0_3 = arith.constant 0 : index
    %4 = vector.load %arg2[%c0_2, %c0_3] : memref<128x128xbf16, #tpu.memory_space<vmem>>, vector<128x128xbf16>
    %c0_4 = arith.constant 0 : index
    %c0_5 = arith.constant 0 : index
    %5 = vector.load %arg3[%c0_4, %c0_5] : memref<128x128xbf16, #tpu.memory_space<vmem>>, vector<128x128xbf16>
    %cst = arith.constant dense<0.000000e+00> : vector<128x128xf32>
    %6 = tpu.matmul %4, %5, %cst {dimension_numbers = #tpu.dot_dimension_numbers<[1], [0], [0], [1], [0, 0, 1, 1], [], []>} : vector<128x128xbf16>, vector<128x128xbf16>, vector<128x128xf32> -> vector<128x128xf32>
    %7 = arith.addf %3, %6 : vector<128x128xf32>
    %c0_6 = arith.constant 0 : index
    %c0_7 = arith.constant 0 : index
    %8 = vector.load %arg7[%c0_6, %c0_7] : memref<128x128xf32, #tpu.memory_space<vmem>>, vector<128x128xf32>
    tpu.vector_store %arg7[%c0_6, %c0_7], %7 {strides = array<i32>} : memref<128x128xf32, #tpu.memory_space<vmem>>, vector<128x128xf32>,
    %c0_i32_8 = arith.constant 0 : i32
    %9 = arith.cmpi eq, %arg1, %c0_i32_8 : i32
    %10 = arith.extui %9 : i1 to i32
    %c0_i32_9 = arith.constant 0 : i32
    %11 = arith.cmpi ne, %10, %c0_i32_9 : i32
    scf.if %11 {
      %c0_10 = arith.constant 0 : index
      %c0_11 = arith.constant 0 : index
      %12 = vector.load %arg7[%c0_10, %c0_11] : memref<128x128xf32, #tpu.memory_space<vmem>>, vector<128x128xf32>
      %c0_12 = arith.constant 0 : index
      %c0_13 = arith.constant 0 : index
      %13 = vector.load %arg4[%c0_12, %c0_13] : memref<1x128xf32, #tpu.memory_space<vmem>>, vector<1x128xf32>
      %14 = vector.broadcast %13 : vector<1x128xf32> to vector<128x128xf32>
      %15 = arith.addf %12, %14 : vector<128x128xf32>
      %cst_14 = arith.constant 0.000000e+00 : f32
      %16 = vector.broadcast %cst_14 : f32 to vector<128x128xf32>
      %17 = arith.maximumf %15, %16 : vector<128x128xf32>
      %18 = arith.truncf %17 : vector<128x128xf32> to vector<128x128xbf16>
      %c0_15 = arith.constant 0 : index
      %c0_16 = arith.constant 0 : index
      %19 = vector.load %arg5[%c0_15, %c0_16] : memref<128x128xbf16, #tpu.memory_space<vmem>>, vector<128x128xbf16>
      %cst_17 = arith.constant dense<0.000000e+00> : vector<128x128xf32>
      %20 = tpu.matmul %18, %19, %cst_17 {dimension_numbers = #tpu.dot_dimension_numbers<[1], [0], [0], [1], [0, 0, 1, 1], [], []>} : vector<128x128xbf16>, vector<128x128xbf16>, vector<128x128xf32> -> vector<128x128xf32>
      %21 = arith.truncf %20 : vector<128x128xf32> to vector<128x128xbf16>
      %c0_18 = arith.constant 0 : index
      %c0_19 = arith.constant 0 : index
      %22 = vector.load %arg6[%c0_18, %c0_19] : memref<128x128xbf16, #tpu.memory_space<vmem>>, vector<128x128xbf16>
      tpu.vector_store %arg6[%c0_18, %c0_19], %21 {strides = array<i32>} : memref<128x128xbf16, #tpu.memory_space<vmem>>, vector<128x128xbf16>,
    } else {
    }
    return
  }
  func.func @transform_0(%arg0: i32, %arg1: i32) -> (i32, i32) {
    %c0_i32 = arith.constant 0 : i32
    return %arg0, %arg1 : i32, i32
  }
  func.func @transform_1(%arg0: i32, %arg1: i32) -> (i32, i32) {
    %c0_i32 = arith.constant 0 : i32
    %c0_i32_0 = arith.constant 0 : i32
    return %arg1, %c0_i32 : i32, i32
  }
  func.func @transform_2(%arg0: i32, %arg1: i32) -> (i32, i32) {
    %c0_i32 = arith.constant 0 : i32
    %c0_i32_0 = arith.constant 0 : i32
    %c0_i32_1 = arith.constant 0 : i32
    return %c0_i32, %c0_i32_0 : i32, i32
  }
  func.func @transform_3(%arg0: i32, %arg1: i32) -> (i32, i32) {
    %c0_i32 = arith.constant 0 : i32
    %c0_i32_0 = arith.constant 0 : i32
    %c0_i32_1 = arith.constant 0 : i32
    return %c0_i32, %c0_i32_0 : i32, i32
  }
  func.func @transform_4(%arg0: i32, %arg1: i32) -> (i32, i32) {
    %c0_i32 = arith.constant 0 : i32
    %c0_i32_0 = arith.constant 0 : i32
    return %arg0, %c0_i32 : i32, i32
  }
}

module attributes {stable_mosaic.version = 11 : i64} {
  func.func @_gcn_final_kernel(%arg0: i32, %arg1: i32, %arg2: memref<128x128xbf16, #tpu.memory_space<vmem>>, %arg3: memref<128x128xbf16, #tpu.memory_space<vmem>>, %arg4: memref<1x128xf32, #tpu.memory_space<vmem>>, %arg5: memref<128x128xbf16, #tpu.memory_space<vmem>>, %arg6: memref<1x128xf32, #tpu.memory_space<vmem>>, %arg7: memref<128x128xbf16, #tpu.memory_space<vmem>>, %arg8: memref<1x128xf32, #tpu.memory_space<vmem>>, %arg9: memref<128x128xf32, #tpu.memory_space<vmem>>, %arg10: memref<128x128xf32, #tpu.memory_space<vmem>>) attributes {dimension_semantics = [#tpu.dimension_semantics<parallel>, #tpu.dimension_semantics<arbitrary>], iteration_bounds = array<i64: 1, 1>, scalar_prefetch = 0 : i64, scratch_operands = 1 : i64, tpu.core_type = #tpu.core_type<tc>, window_params = [{transform_indices = @transform_0, window_bounds = array<i64: 128, 128>}, {transform_indices = @transform_1, window_bounds = array<i64: 128, 128>}, {pipeline_mode = #tpu.pipeline_mode<synchronous>, transform_indices = @transform_2, window_bounds = array<i64: 1, 128>}, {pipeline_mode = #tpu.pipeline_mode<synchronous>, transform_indices = @transform_3, window_bounds = array<i64: 128, 128>}, {pipeline_mode = #tpu.pipeline_mode<synchronous>, transform_indices = @transform_4, window_bounds = array<i64: 1, 128>}, {pipeline_mode = #tpu.pipeline_mode<synchronous>, transform_indices = @transform_5, window_bounds = array<i64: 128, 128>}, {pipeline_mode = #tpu.pipeline_mode<synchronous>, transform_indices = @transform_6, window_bounds = array<i64: 1, 128>}, {transform_indices = @transform_7, window_bounds = array<i64: 128, 128>}]} {
    %c0_i32 = arith.constant 0 : i32
    %0 = arith.cmpi eq, %arg1, %c0_i32 : i32
    %1 = arith.extui %0 : i1 to i32
    %c0_i32_0 = arith.constant 0 : i32
    %2 = arith.cmpi ne, %1, %c0_i32_0 : i32
    scf.if %2 {
      %cst_10 = arith.constant 0.000000e+00 : f32
      %12 = vector.broadcast %cst_10 : f32 to vector<128x128xf32>
      %c0_11 = arith.constant 0 : index
      %c0_12 = arith.constant 0 : index
      %13 = vector.load %arg10[%c0_11, %c0_12] : memref<128x128xf32, #tpu.memory_space<vmem>>, vector<128x128xf32>
      tpu.vector_store %arg10[%c0_11, %c0_12], %12 {strides = array<i32>} : memref<128x128xf32, #tpu.memory_space<vmem>>, vector<128x128xf32>,
    } else {
    }
    %c0 = arith.constant 0 : index
    %c0_1 = arith.constant 0 : index
    %3 = vector.load %arg10[%c0, %c0_1] : memref<128x128xf32, #tpu.memory_space<vmem>>, vector<128x128xf32>
    %c0_2 = arith.constant 0 : index
    %c0_3 = arith.constant 0 : index
    %4 = vector.load %arg2[%c0_2, %c0_3] : memref<128x128xbf16, #tpu.memory_space<vmem>>, vector<128x128xbf16>
    %c0_4 = arith.constant 0 : index
    %c0_5 = arith.constant 0 : index
    %5 = vector.load %arg3[%c0_4, %c0_5] : memref<128x128xbf16, #tpu.memory_space<vmem>>, vector<128x128xbf16>
    %cst = arith.constant dense<0.000000e+00> : vector<128x128xf32>
    %6 = tpu.matmul %4, %5, %cst {dimension_numbers = #tpu.dot_dimension_numbers<[1], [0], [0], [1], [0, 0, 1, 1], [], []>} : vector<128x128xbf16>, vector<128x128xbf16>, vector<128x128xf32> -> vector<128x128xf32>
    %7 = arith.addf %3, %6 : vector<128x128xf32>
    %c0_6 = arith.constant 0 : index
    %c0_7 = arith.constant 0 : index
    %8 = vector.load %arg10[%c0_6, %c0_7] : memref<128x128xf32, #tpu.memory_space<vmem>>, vector<128x128xf32>
    tpu.vector_store %arg10[%c0_6, %c0_7], %7 {strides = array<i32>} : memref<128x128xf32, #tpu.memory_space<vmem>>, vector<128x128xf32>,
    %c0_i32_8 = arith.constant 0 : i32
    %9 = arith.cmpi eq, %arg1, %c0_i32_8 : i32
    %10 = arith.extui %9 : i1 to i32
    %c0_i32_9 = arith.constant 0 : i32
    %11 = arith.cmpi ne, %10, %c0_i32_9 : i32
    scf.if %11 {
      %c0_10 = arith.constant 0 : index
      %c0_11 = arith.constant 0 : index
      %12 = vector.load %arg10[%c0_10, %c0_11] : memref<128x128xf32, #tpu.memory_space<vmem>>, vector<128x128xf32>
      %c0_12 = arith.constant 0 : index
      %c0_13 = arith.constant 0 : index
      %13 = vector.load %arg4[%c0_12, %c0_13] : memref<1x128xf32, #tpu.memory_space<vmem>>, vector<1x128xf32>
      %14 = vector.broadcast %13 : vector<1x128xf32> to vector<128x128xf32>
      %15 = arith.addf %12, %14 : vector<128x128xf32>
      %cst_14 = arith.constant 0.000000e+00 : f32
      %16 = vector.broadcast %cst_14 : f32 to vector<128x128xf32>
      %17 = arith.maximumf %15, %16 : vector<128x128xf32>
      %18 = arith.truncf %17 : vector<128x128xf32> to vector<128x128xbf16>
      %c0_15 = arith.constant 0 : index
      %c0_16 = arith.constant 0 : index
      %19 = vector.load %arg5[%c0_15, %c0_16] : memref<128x128xbf16, #tpu.memory_space<vmem>>, vector<128x128xbf16>
      %cst_17 = arith.constant dense<0.000000e+00> : vector<128x128xf32>
      %20 = tpu.matmul %18, %19, %cst_17 {dimension_numbers = #tpu.dot_dimension_numbers<[1], [0], [0], [1], [0, 0, 1, 1], [], []>} : vector<128x128xbf16>, vector<128x128xbf16>, vector<128x128xf32> -> vector<128x128xf32>
      %c0_18 = arith.constant 0 : index
      %c0_19 = arith.constant 0 : index
      %21 = vector.load %arg6[%c0_18, %c0_19] : memref<1x128xf32, #tpu.memory_space<vmem>>, vector<1x128xf32>
      %22 = vector.broadcast %21 : vector<1x128xf32> to vector<128x128xf32>
      %23 = arith.addf %20, %22 : vector<128x128xf32>
      %cst_20 = arith.constant 0.000000e+00 : f32
      %24 = vector.broadcast %cst_20 : f32 to vector<128x128xf32>
      %25 = arith.maximumf %23, %24 : vector<128x128xf32>
      %26 = arith.truncf %25 : vector<128x128xf32> to vector<128x128xbf16>
      %c0_21 = arith.constant 0 : index
      %c0_22 = arith.constant 0 : index
      %27 = vector.load %arg7[%c0_21, %c0_22] : memref<128x128xbf16, #tpu.memory_space<vmem>>, vector<128x128xbf16>
      %cst_23 = arith.constant dense<0.000000e+00> : vector<128x128xf32>
      %28 = tpu.matmul %26, %27, %cst_23 {dimension_numbers = #tpu.dot_dimension_numbers<[1], [0], [0], [1], [0, 0, 1, 1], [], []>} : vector<128x128xbf16>, vector<128x128xbf16>, vector<128x128xf32> -> vector<128x128xf32>
      %c0_24 = arith.constant 0 : index
      %c0_25 = arith.constant 0 : index
      %29 = vector.load %arg8[%c0_24, %c0_25] : memref<1x128xf32, #tpu.memory_space<vmem>>, vector<1x128xf32>
      %30 = vector.broadcast %29 : vector<1x128xf32> to vector<128x128xf32>
      %31 = arith.addf %28, %30 : vector<128x128xf32>
      %cst_26 = arith.constant dense<0xFF800000> : vector<128xf32>
      %32 = vector.multi_reduction <maximumf>, %31, %cst_26 [1] : vector<128x128xf32> to vector<128xf32>
      %33 = vector.shape_cast %32 : vector<128xf32> to vector<128x1xf32>
      %34 = vector.broadcast %33 : vector<128x1xf32> to vector<128x128xf32>
      %35 = arith.subf %31, %34 : vector<128x128xf32>
      %36 = math.exp %35 : vector<128x128xf32>
      %cst_27 = arith.constant dense<0.000000e+00> : vector<128xf32>
      %37 = vector.multi_reduction <add>, %36, %cst_27 [1] : vector<128x128xf32> to vector<128xf32>
      %38 = vector.shape_cast %37 : vector<128xf32> to vector<128x1xf32>
      %39 = math.log %38 : vector<128x1xf32>
      %40 = vector.broadcast %39 : vector<128x1xf32> to vector<128x128xf32>
      %41 = arith.subf %35, %40 : vector<128x128xf32>
      %c0_28 = arith.constant 0 : index
      %c0_29 = arith.constant 0 : index
      %42 = vector.load %arg9[%c0_28, %c0_29] : memref<128x128xf32, #tpu.memory_space<vmem>>, vector<128x128xf32>
      tpu.vector_store %arg9[%c0_28, %c0_29], %41 {strides = array<i32>} : memref<128x128xf32, #tpu.memory_space<vmem>>, vector<128x128xf32>,
    } else {
    }
    return
  }
  func.func @transform_0(%arg0: i32, %arg1: i32) -> (i32, i32) {
    %c0_i32 = arith.constant 0 : i32
    return %arg0, %arg1 : i32, i32
  }
  func.func @transform_1(%arg0: i32, %arg1: i32) -> (i32, i32) {
    %c0_i32 = arith.constant 0 : i32
    %c0_i32_0 = arith.constant 0 : i32
    return %arg1, %c0_i32 : i32, i32
  }
  func.func @transform_2(%arg0: i32, %arg1: i32) -> (i32, i32) {
    %c0_i32 = arith.constant 0 : i32
    %c0_i32_0 = arith.constant 0 : i32
    %c0_i32_1 = arith.constant 0 : i32
    return %c0_i32, %c0_i32_0 : i32, i32
  }
  func.func @transform_3(%arg0: i32, %arg1: i32) -> (i32, i32) {
    %c0_i32 = arith.constant 0 : i32
    %c0_i32_0 = arith.constant 0 : i32
    %c0_i32_1 = arith.constant 0 : i32
    return %c0_i32, %c0_i32_0 : i32, i32
  }
  func.func @transform_4(%arg0: i32, %arg1: i32) -> (i32, i32) {
    %c0_i32 = arith.constant 0 : i32
    %c0_i32_0 = arith.constant 0 : i32
    %c0_i32_1 = arith.constant 0 : i32
    return %c0_i32, %c0_i32_0 : i32, i32
  }
  func.func @transform_5(%arg0: i32, %arg1: i32) -> (i32, i32) {
    %c0_i32 = arith.constant 0 : i32
    %c0_i32_0 = arith.constant 0 : i32
    %c0_i32_1 = arith.constant 0 : i32
    return %c0_i32, %c0_i32_0 : i32, i32
  }
  func.func @transform_6(%arg0: i32, %arg1: i32) -> (i32, i32) {
    %c0_i32 = arith.constant 0 : i32
    %c0_i32_0 = arith.constant 0 : i32
    %c0_i32_1 = arith.constant 0 : i32
    return %c0_i32, %c0_i32_0 : i32, i32
  }
  func.func @transform_7(%arg0: i32, %arg1: i32) -> (i32, i32) {
    %c0_i32 = arith.constant 0 : i32
    %c0_i32_0 = arith.constant 0 : i32
    return %arg0, %c0_i32 : i32, i32
  }
}

</mosaic_0001>

<bundles_post_ra>
// kernel: _gcn_forward_impl.4
= control target key start
LH: loop header
LB: loop body
LE: loop exit
PB: predicated region body
PF: predicated region fallthrough
CT: control target
= control target key end

     0   :  { %s462_s1 = inlined_call_operand.vmem [shape: bf16[128,128], index: 1, kind: input, shape index: {}]   ;;  %s463_s0 = inlined_call_operand.vmem [shape: bf16[128,128], index: 0, kind: input, shape index: {}]   ;;  %s464_s2 = inlined_call_operand.vmem [shape: bf16[128,128], index: 2, kind: output, shape index: {}]  }
   0x1   :  { %v303_v0 = vld [vmem:[%s462_s1 + $0x38] sm:$0xff]  ;;  %v302_v1 = vld [vmem:[%s462_s1 + $0x30] sm:$0xff]  ;;  %v301_v2 = vld [vmem:[%s462_s1 + $0x28] sm:$0xff] }
   0x2   :  { %139 = vmatpush.bf16.msra.mxu0 %v303_v0  ;;  %351 = vmatpush.bf16.msra.mxu1 %v303_v0  ;;  %v300_v3 = vld [vmem:[%s462_s1 + $0x20] sm:$0xff]  ;;  %v299_v4 = vld [vmem:[%s462_s1 + $0x18] sm:$0xff]  ;;  %v298_v5 = vld [vmem:[%s462_s1 + $0x10] sm:$0xff] }
   0x3   :  { %352 = vmatpush.bf16.msra.mxu2 %v303_v0  ;;  %353 = vmatpush.bf16.msra.mxu3 %v303_v0  ;;  %v297_v6 = vld [vmem:[%s462_s1 + $0x8] sm:$0xff]  ;;  %v296_v7 = vld [vmem:[%s462_s1] sm:$0xff]  ;;  %v290_v9 = vld [vmem:[%s463_s0 + $0x10] sm:$0xff] }
   0x4   :  { %v288_v8 = vld [vmem:[%s463_s0] sm:$0xff]  ;;  %v294_v11 = vld [vmem:[%s463_s0 + $0x30] sm:$0xff]  ;;  %v289_v12 = vld [vmem:[%s463_s0 + $0x8] sm:$0xff] }
   0x5   :  { %v292_v10 = vld [vmem:[%s463_s0 + $0x20] sm:$0xff]  ;;  %v291_v13 = vld [vmem:[%s463_s0 + $0x18] sm:$0xff]  ;;  %v293_v14 = vld [vmem:[%s463_s0 + $0x28] sm:$0xff] }
   0x6   :  { %140 = vmatpush.bf16.msra.mxu0 %v302_v1  ;;  %354 = vmatpush.bf16.msra.mxu1 %v302_v1  ;;  %v295_v15 = vld [vmem:[%s463_s0 + $0x38] sm:$0xff] }
   0x7   :  { %355 = vmatpush.bf16.msra.mxu2 %v302_v1  ;;  %356 = vmatpush.bf16.msra.mxu3 %v302_v1 }
   0xa   :  { %141 = vmatpush.bf16.msra.mxu0 %v301_v2  ;;  %357 = vmatpush.bf16.msra.mxu1 %v301_v2 }
   0xb   :  { %358 = vmatpush.bf16.msra.mxu2 %v301_v2  ;;  %359 = vmatpush.bf16.msra.mxu3 %v301_v2 }
   0xe   :  { %142 = vmatpush.bf16.msra.mxu0 %v300_v3  ;;  %360 = vmatpush.bf16.msra.mxu1 %v300_v3 }
   0xf   :  { %361 = vmatpush.bf16.msra.mxu2 %v300_v3  ;;  %362 = vmatpush.bf16.msra.mxu3 %v300_v3 }
  0x12   :  { %143 = vmatpush.bf16.msra.mxu0 %v299_v4  ;;  %363 = vmatpush.bf16.msra.mxu1 %v299_v4 }
  0x13   :  { %364 = vmatpush.bf16.msra.mxu2 %v299_v4  ;;  %365 = vmatpush.bf16.msra.mxu3 %v299_v4 }
  0x16   :  { %144 = vmatpush.bf16.msra.mxu0 %v298_v5  ;;  %366 = vmatpush.bf16.msra.mxu1 %v298_v5 }
  0x17   :  { %367 = vmatpush.bf16.msra.mxu2 %v298_v5  ;;  %368 = vmatpush.bf16.msra.mxu3 %v298_v5 }
  0x1a   :  { %145 = vmatpush.bf16.msra.mxu0 %v297_v6  ;;  %369 = vmatpush.bf16.msra.mxu1 %v297_v6 }
  0x1b   :  { %370 = vmatpush.bf16.msra.mxu2 %v297_v6  ;;  %371 = vmatpush.bf16.msra.mxu3 %v297_v6 }
  0x1e   :  { %146 = vmatpush.bf16.msra.mxu0 %v296_v7  ;;  %372 = vmatpush.bf16.msra.mxu1 %v296_v7 }
  0x1f   :  { %373 = vmatpush.bf16.msra.mxu2 %v296_v7  ;;  %374 = vmatpush.bf16.msra.mxu3 %v296_v7 }
  0x21   :  { %147 = vmatmul.bf16.vlgmr.msra.gmra.mxu0 %v288_v8  ;;  %157 = vmatmul.bf16.vlgmr.msra.gmra.mxu1 %v290_v9 }
  0x22   :  { %167 = vmatmul.bf16.vlgmr.msra.gmra.mxu2 %v292_v10  ;;  %177 = vmatmul.bf16.vlgmr.msra.gmra.mxu3 %v294_v11 }
  0x31   :  { %152 = vmatmul.bf16.gmra.mxu0 %v289_v12  ;;  %162 = vmatmul.bf16.gmra.mxu1 %v291_v13 }
  0x32   :  { %172 = vmatmul.bf16.gmra.mxu2 %v293_v14  ;;  %182 = vmatmul.bf16.gmra.mxu3 %v295_v15 }
  0x9e   :  { %v148_v16 = vpop.f32.mrf.mxu0  ;;  %v158_v17 = vpop.f32.mrf.mxu1 }
  0xa5   :  { %v168_v18 = vpop.f32.mrf.mxu2  ;;  %v178_v19 = vpop.f32.mrf.mxu3 }
  0xa6   :  { %v150_v20 = vpop.f32.mrf.mxu0  ;;  %v160_v21 = vpop.f32.mrf.mxu1 }
  0xa7   :  { %v307_v22 = vpack.c.bf16 %v150_v20, %v148_v16  ;;  %v317_v23 = vpack.c.bf16 %v160_v21, %v158_v17 }
  0xa9   :  { %308 = vst [vmem:[%s464_s2] sm:$0xff] %v307_v22  }
  0xaa   :  { %345 = vst [vmem:[%s464_s2 + $0x10] sm:$0xff] %v317_v23  }
  0xad   :  { %v170_v24 = vpop.f32.mrf.mxu2  ;;  %v180_v25 = vpop.f32.mrf.mxu3 }
  0xae   :  { %v327_v26 = vpack.c.bf16 %v170_v24, %v168_v18  ;;  %v337_v27 = vpack.c.bf16 %v180_v25, %v178_v19  ;;  %v153_v28 = vpop.f32.mrf.mxu0  ;;  %v163_v29 = vpop.f32.mrf.mxu1 }
  0xb0   :  { %347 = vst [vmem:[%s464_s2 + $0x20] sm:$0xff] %v327_v26  }
  0xb1   :  { %349 = vst [vmem:[%s464_s2 + $0x30] sm:$0xff] %v337_v27  }
  0xb5   :  { %v173_v30 = vpop.f32.mrf.mxu2  ;;  %v183_v31 = vpop.f32.mrf.mxu3 }
  0xb6   :  { %v155_v32 = vpop.f32.mrf.mxu0  ;;  %v165_v33 = vpop.f32.mrf.mxu1 }
  0xb7   :  { %v312_v34 = vpack.c.bf16 %v155_v32, %v153_v28  ;;  %v322_v35 = vpack.c.bf16 %v165_v33, %v163_v29 }
  0xb9   :  { %344 = vst [vmem:[%s464_s2 + $0x8] sm:$0xff] %v312_v34  }
  0xba   :  { %346 = vst [vmem:[%s464_s2 + $0x18] sm:$0xff] %v322_v35  }
  0xbd   :  { %v175_v36 = vpop.f32.mrf.mxu2  ;;  %v185_v37 = vpop.f32.mrf.mxu3 }
  0xbe   :  { %v332_v38 = vpack.c.bf16 %v175_v36, %v173_v30  ;;  %v342_v39 = vpack.c.bf16 %v185_v37, %v183_v31 }
  0xc0   :  { %348 = vst [vmem:[%s464_s2 + $0x28] sm:$0xff] %v332_v38  }
  0xc1   :  { %350 = vst [vmem:[%s464_s2 + $0x38] sm:$0xff] %v342_v39  }

// kernel: _gcn_forward_impl.5
= control target key start
LH: loop header
LB: loop body
LE: loop exit
PB: predicated region body
PF: predicated region fallthrough
CT: control target
= control target key end

     0   :  { %s782_s1 = inlined_call_operand.vmem [shape: bf16[128,128], index: 1, kind: input, shape index: {}]   ;;  %s783_s2 = inlined_call_operand.vmem [shape: f32[1,128], index: 2, kind: input, shape index: {}]   ;;  %s784_s0 = inlined_call_operand.vmem [shape: bf16[128,128], index: 0, kind: input, shape index: {}]   ;;  %s785_s3 = inlined_call_operand.vmem [shape: bf16[128,128], index: 3, kind: input, shape index: {}]   ;;  %s786_s4 = inlined_call_operand.vmem [shape: bf16[128,128], index: 4, kind: output, shape index: {}]  }
   0x1   :  { %v585_v0 = vld [vmem:[%s782_s1 + $0x38] sm:$0xff]  ;;  %v584_v1 = vld [vmem:[%s782_s1 + $0x30] sm:$0xff]  ;;  %v583_v2 = vld [vmem:[%s782_s1 + $0x28] sm:$0xff] }
   0x2   :  { %181 = vmatpush.bf16.msra.mxu0 %v585_v0  ;;  %641 = vmatpush.bf16.msra.mxu2 %v585_v0  ;;  %v582_v3 = vld [vmem:[%s782_s1 + $0x20] sm:$0xff]  ;;  %v581_v4 = vld [vmem:[%s782_s1 + $0x18] sm:$0xff]  ;;  %v580_v5 = vld [vmem:[%s782_s1 + $0x10] sm:$0xff] }
   0x3   :  { %v579_v6 = vld [vmem:[%s782_s1 + $0x8] sm:$0xff]  ;;  %v578_v7 = vld [vmem:[%s782_s1] sm:$0xff]  ;;  %v593_v12 = vld [vmem:[%s785_s3 + $0x38] sm:$0xff] }
   0x4   :  { %v570_v8 = vld [vmem:[%s784_s0] sm:$0xff]  ;;  %v571_v10 = vld [vmem:[%s784_s0 + $0x8] sm:$0xff]  ;;  %389 = vmatpush.bf16.msra.mxu1 %v593_v12  ;;  %v592_v13 = vld [vmem:[%s785_s3 + $0x30] sm:$0xff]  ;;  %649 = vmatpush.bf16.msra.mxu3 %v593_v12 }
   0x5   :  { %v574_v9 = vld [vmem:[%s784_s0 + $0x20] sm:$0xff]  ;;  %v575_v11 = vld [vmem:[%s784_s0 + $0x28] sm:$0xff]  ;;  %v572_v16 = vld [vmem:[%s784_s0 + $0x10] sm:$0xff] }
   0x6   :  { %182 = vmatpush.bf16.msra.mxu0 %v584_v1  ;;  %642 = vmatpush.bf16.msra.mxu2 %v584_v1  ;;  %v591_v14 = vld [vmem:[%s785_s3 + $0x28] sm:$0xff]  ;;  %v590_v15 = vld [vmem:[%s785_s3 + $0x20] sm:$0xff]  ;;  %v576_v17 = vld [vmem:[%s784_s0 + $0x30] sm:$0xff] }
   0x7   :  { %v573_v18 = vld [vmem:[%s784_s0 + $0x18] sm:$0xff]  ;;  %v588_v21 = vld [vmem:[%s785_s3 + $0x10] sm:$0xff]  ;;  %v587_v22 = vld [vmem:[%s785_s3 + $0x8] sm:$0xff] }
   0x8   :  { %390 = vmatpush.bf16.msra.mxu1 %v592_v13  ;;  %650 = vmatpush.bf16.msra.mxu3 %v592_v13  ;;  %v577_v19 = vld [vmem:[%s784_s0 + $0x38] sm:$0xff]  ;;  %v586_v23 = vld [vmem:[%s785_s3] sm:$0xff] }
   0x9   :  { %v589_v20 = vld [vmem:[%s785_s3 + $0x18] sm:$0xff]  ;;  %v657_v25 = vld [vmem:[%s783_s2] ss:$0 sm:$0xff] }
   0xa   :  { %183 = vmatpush.bf16.msra.mxu0 %v583_v2  ;;  %643 = vmatpush.bf16.msra.mxu2 %v583_v2 }
   0xc   :  { %391 = vmatpush.bf16.msra.mxu1 %v591_v14  ;;  %651 = vmatpush.bf16.msra.mxu3 %v591_v14 }
   0xe   :  { %184 = vmatpush.bf16.msra.mxu0 %v582_v3  ;;  %644 = vmatpush.bf16.msra.mxu2 %v582_v3 }
  0x10   :  { %392 = vmatpush.bf16.msra.mxu1 %v590_v15  ;;  %652 = vmatpush.bf16.msra.mxu3 %v590_v15 }
  0x12   :  { %185 = vmatpush.bf16.msra.mxu0 %v581_v4  ;;  %645 = vmatpush.bf16.msra.mxu2 %v581_v4 }
  0x14   :  { %393 = vmatpush.bf16.msra.mxu1 %v589_v20  ;;  %653 = vmatpush.bf16.msra.mxu3 %v589_v20 }
  0x16   :  { %186 = vmatpush.bf16.msra.mxu0 %v580_v5  ;;  %646 = vmatpush.bf16.msra.mxu2 %v580_v5 }
  0x18   :  { %394 = vmatpush.bf16.msra.mxu1 %v588_v21  ;;  %654 = vmatpush.bf16.msra.mxu3 %v588_v21 }
  0x1a   :  { %187 = vmatpush.bf16.msra.mxu0 %v579_v6  ;;  %647 = vmatpush.bf16.msra.mxu2 %v579_v6 }
  0x1c   :  { %395 = vmatpush.bf16.msra.mxu1 %v587_v22  ;;  %655 = vmatpush.bf16.msra.mxu3 %v587_v22 }
  0x1e   :  { %188 = vmatpush.bf16.msra.mxu0 %v578_v7  ;;  %648 = vmatpush.bf16.msra.mxu2 %v578_v7 }
  0x20   :  { %396 = vmatpush.bf16.msra.mxu1 %v586_v23  ;;  %656 = vmatpush.bf16.msra.mxu3 %v586_v23 }
  0x21   :  { %189 = vmatmul.bf16.vlgmr.msra.gmra.mxu0 %v570_v8  ;;  %209 = vmatmul.bf16.vlgmr.msra.gmra.mxu2 %v574_v9 }
  0x31   :  { %194 = vmatmul.bf16.gmra.mxu0 %v571_v10  ;;  %214 = vmatmul.bf16.gmra.mxu2 %v575_v11 }
  0x41   :  { %199 = vmatmul.bf16.gmra.mxu0 %v572_v16  ;;  %219 = vmatmul.bf16.gmra.mxu2 %v576_v17 }
  0x51   :  { %204 = vmatmul.bf16.gmra.mxu0 %v573_v18  ;;  %224 = vmatmul.bf16.gmra.mxu2 %v577_v19 }
  0x9e   :  { %v190_v24 = vpop.f32.mrf.mxu0 }
  0x9f   :  { %v285_v26 = vadd.f32 %v657_v25, %v190_v24 }
  0xa1   :  { %v301_v29 = vmax.f32 %v285_v26, 0.0 }
  0xa4   :  { %v210_v27 = vpop.f32.mrf.mxu2 }
  0xa5   :  { %v293_v32 = vadd.f32 %v657_v25, %v210_v27 }
  0xa6   :  { %v192_v28 = vpop.f32.mrf.mxu0 }
  0xa7   :  { %v286_v30 = vadd.f32 %v657_v25, %v192_v28  ;;  %v309_v37 = vmax.f32 %v293_v32, 0.0 }
  0xa9   :  { %v302_v31 = vmax.f32 %v286_v30, 0.0 }
  0xab   :  { %v317_v33 = vpack.c.bf16 %v302_v31, %v301_v29 }
  0xac   :  { %v212_v34 = vpop.f32.mrf.mxu2 }
  0xad   :  { %v294_v35 = vadd.f32 %v657_v25, %v212_v34  ;;  %397 = vmatmul.bf16.vlgmr.msra.gmra.mxu1 %v317_v33 }
  0xae   :  { %v195_v36 = vpop.f32.mrf.mxu0 }
  0xaf   :  { %v310_v38 = vmax.f32 %v294_v35, 0.0  ;;  %v287_v40 = vadd.f32 %v657_v25, %v195_v36 }
  0xb1   :  { %v321_v39 = vpack.c.bf16 %v310_v38, %v309_v37  ;;  %v303_v43 = vmax.f32 %v287_v40, 0.0 }
  0xb3   :  { %417 = vmatmul.bf16.vlgmr.msra.gmra.mxu3 %v321_v39 }
  0xb4   :  { %v215_v41 = vpop.f32.mrf.mxu2 }
  0xb5   :  { %v295_v46 = vadd.f32 %v657_v25, %v215_v41 }
  0xb6   :  { %v197_v42 = vpop.f32.mrf.mxu0 }
  0xb7   :  { %v288_v44 = vadd.f32 %v657_v25, %v197_v42  ;;  %v311_v51 = vmax.f32 %v295_v46, 0.0 }
  0xb9   :  { %v304_v45 = vmax.f32 %v288_v44, 0.0 }
  0xbb   :  { %v318_v47 = vpack.c.bf16 %v304_v45, %v303_v43 }
  0xbc   :  { %v217_v48 = vpop.f32.mrf.mxu2 }
  0xbd   :  { %v296_v49 = vadd.f32 %v657_v25, %v217_v48  ;;  %402 = vmatmul.bf16.gmra.mxu1 %v318_v47 }
  0xbe   :  { %v200_v50 = vpop.f32.mrf.mxu0 }
  0xbf   :  { %v312_v52 = vmax.f32 %v296_v49, 0.0  ;;  %v289_v54 = vadd.f32 %v657_v25, %v200_v50 }
  0xc1   :  { %v322_v53 = vpack.c.bf16 %v312_v52, %v311_v51  ;;  %v305_v57 = vmax.f32 %v289_v54, 0.0 }
  0xc3   :  { %422 = vmatmul.bf16.gmra.mxu3 %v322_v53 }
  0xc4   :  { %v220_v55 = vpop.f32.mrf.mxu2 }
  0xc5   :  { %v297_v60 = vadd.f32 %v657_v25, %v220_v55 }
  0xc6   :  { %v202_v56 = vpop.f32.mrf.mxu0 }
  0xc7   :  { %v290_v58 = vadd.f32 %v657_v25, %v202_v56  ;;  %v313_v1 = vmax.f32 %v297_v60, 0.0 }
  0xc9   :  { %v306_v59 = vmax.f32 %v290_v58, 0.0 }
  0xcb   :  { %v319_v61 = vpack.c.bf16 %v306_v59, %v305_v57 }
  0xcc   :  { %v222_v62 = vpop.f32.mrf.mxu2 }
  0xcd   :  { %v298_v63 = vadd.f32 %v657_v25, %v222_v62  ;;  %407 = vmatmul.bf16.gmra.mxu1 %v319_v61 }
  0xce   :  { %v205_v0 = vpop.f32.mrf.mxu0 }
  0xcf   :  { %v314_v2 = vmax.f32 %v298_v63, 0.0  ;;  %v291_v4 = vadd.f32 %v657_v25, %v205_v0 }
  0xd1   :  { %v323_v3 = vpack.c.bf16 %v314_v2, %v313_v1  ;;  %v307_v7 = vmax.f32 %v291_v4, 0.0 }
  0xd3   :  { %427 = vmatmul.bf16.gmra.mxu3 %v323_v3 }
  0xd4   :  { %v225_v5 = vpop.f32.mrf.mxu2 }
  0xd5   :  { %v299_v10 = vadd.f32 %v657_v25, %v225_v5 }
  0xd6   :  { %v207_v6 = vpop.f32.mrf.mxu0 }
  0xd7   :  { %v292_v8 = vadd.f32 %v657_v25, %v207_v6  ;;  %v315_v14 = vmax.f32 %v299_v10, 0.0 }
  0xd9   :  { %v308_v9 = vmax.f32 %v292_v8, 0.0 }
  0xdb   :  { %v320_v11 = vpack.c.bf16 %v308_v9, %v307_v7 }
  0xdc   :  { %v227_v12 = vpop.f32.mrf.mxu2 }
  0xdd   :  { %v300_v13 = vadd.f32 %v657_v25, %v227_v12  ;;  %412 = vmatmul.bf16.gmra.mxu1 %v320_v11 }
  0xdf   :  { %v316_v15 = vmax.f32 %v300_v13, 0.0 }
  0xe1   :  { %v324_v16 = vpack.c.bf16 %v316_v15, %v315_v14 }
  0xe3   :  { %432 = vmatmul.bf16.gmra.mxu3 %v324_v16 }
 0x12a   :  { %v398_v17 = vpop.f32.mrf.mxu1 }
 0x132   :  { %v400_v18 = vpop.f32.mrf.mxu1 }
 0x133   :  { %v597_v19 = vpack.c.bf16 %v400_v18, %v398_v17 }
 0x135   :  { %598 = vst [vmem:[%s786_s4] sm:$0xff] %v597_v19  }
 0x136   :  { %v418_v20 = vpop.f32.mrf.mxu3 }
 0x13a   :  { %v403_v21 = vpop.f32.mrf.mxu1 }
 0x13e   :  { %v420_v22 = vpop.f32.mrf.mxu3 }
 0x13f   :  { %v617_v23 = vpack.c.bf16 %v420_v22, %v418_v20 }
 0x141   :  { %637 = vst [vmem:[%s786_s4 + $0x20] sm:$0xff] %v617_v23  }
 0x142   :  { %v405_v24 = vpop.f32.mrf.mxu1 }
 0x143   :  { %v602_v25 = vpack.c.bf16 %v405_v24, %v403_v21 }
 0x145   :  { %634 = vst [vmem:[%s786_s4 + $0x8] sm:$0xff] %v602_v25  }
 0x146   :  { %v423_v26 = vpop.f32.mrf.mxu3 }
 0x14a   :  { %v408_v27 = vpop.f32.mrf.mxu1 }
 0x14e   :  { %v425_v28 = vpop.f32.mrf.mxu3 }
 0x14f   :  { %v622_v29 = vpack.c.bf16 %v425_v28, %v423_v26 }
 0x151   :  { %638 = vst [vmem:[%s786_s4 + $0x28] sm:$0xff] %v622_v29  }
 0x152   :  { %v410_v30 = vpop.f32.mrf.mxu1 }
 0x153   :  { %v607_v31 = vpack.c.bf16 %v410_v30, %v408_v27 }
 0x155   :  { %635 = vst [vmem:[%s786_s4 + $0x10] sm:$0xff] %v607_v31  }
 0x156   :  { %v428_v32 = vpop.f32.mrf.mxu3 }
 0x15a   :  { %v413_v33 = vpop.f32.mrf.mxu1 }
 0x15e   :  { %v430_v34 = vpop.f32.mrf.mxu3 }
 0x15f   :  { %v627_v35 = vpack.c.bf16 %v430_v34, %v428_v32 }
 0x161   :  { %639 = vst [vmem:[%s786_s4 + $0x30] sm:$0xff] %v627_v35  }
 0x162   :  { %v415_v36 = vpop.f32.mrf.mxu1 }
 0x163   :  { %v612_v37 = vpack.c.bf16 %v415_v36, %v413_v33 }
 0x165   :  { %636 = vst [vmem:[%s786_s4 + $0x18] sm:$0xff] %v612_v37  }
 0x166   :  { %v433_v38 = vpop.f32.mrf.mxu3 }
 0x16e   :  { %v435_v39 = vpop.f32.mrf.mxu3 }
 0x16f   :  { %v632_v40 = vpack.c.bf16 %v435_v39, %v433_v38 }
 0x171   :  { %640 = vst [vmem:[%s786_s4 + $0x38] sm:$0xff] %v632_v40  }

// kernel: _gcn_forward_impl.7
= control target key start
LH: loop header
LB: loop body
LE: loop exit
PB: predicated region body
PF: predicated region fallthrough
CT: control target
= control target key end

     0   :  { %s1338_s1 = inlined_call_operand.vmem [shape: bf16[128,128], index: 1, kind: input, shape index: {}]   ;;  %s1339_s2 = inlined_call_operand.vmem [shape: f32[1,128], index: 2, kind: input, shape index: {}]   ;;  %s1340_s0 = inlined_call_operand.vmem [shape: bf16[128,128], index: 0, kind: input, shape index: {}]   ;;  %s1341_s3 = inlined_call_operand.vmem [shape: bf16[128,128], index: 3, kind: input, shape index: {}]   ;;  %s1342_s4 = inlined_call_operand.vmem [shape: f32[1,128], index: 4, kind: input, shape index: {}]   ;;  %s1343_s5 = inlined_call_operand.vmem [shape: bf16[128,128], index: 5, kind: input, shape index: {}]   ;;  %s1344_s6 = inlined_call_operand.vmem [shape: f32[1,128], index: 6, kind: input, shape index: {}]   ;;  %s1345_s7 = inlined_call_operand.vmem [shape: f32[128,128], index: 7, kind: output, shape index: {}]  }
   0x1   :  { %v915_v0 = vld [vmem:[%s1338_s1 + $0x38] sm:$0xff]  ;;  %v914_v1 = vld [vmem:[%s1338_s1 + $0x30] sm:$0xff]  ;;  %v913_v2 = vld [vmem:[%s1338_s1 + $0x28] sm:$0xff] }
   0x2   :  { %190 = vmatpush.bf16.msra.mxu0 %v915_v0  ;;  %932 = vmatpush.bf16.msra.mxu3 %v915_v0  ;;  %v912_v3 = vld [vmem:[%s1338_s1 + $0x20] sm:$0xff]  ;;  %v911_v4 = vld [vmem:[%s1338_s1 + $0x18] sm:$0xff]  ;;  %v910_v5 = vld [vmem:[%s1338_s1 + $0x10] sm:$0xff] }
   0x3   :  { %v909_v6 = vld [vmem:[%s1338_s1 + $0x8] sm:$0xff]  ;;  %v908_v7 = vld [vmem:[%s1338_s1] sm:$0xff]  ;;  %v906_v9 = vld [vmem:[%s1340_s0 + $0x30] sm:$0xff] }
   0x4   :  { %v900_v8 = vld [vmem:[%s1340_s0] sm:$0xff]  ;;  %v901_v10 = vld [vmem:[%s1340_s0 + $0x8] sm:$0xff]  ;;  %v907_v11 = vld [vmem:[%s1340_s0 + $0x38] sm:$0xff] }
   0x5   :  { %v902_v12 = vld [vmem:[%s1340_s0 + $0x10] sm:$0xff]  ;;  %v903_v13 = vld [vmem:[%s1340_s0 + $0x18] sm:$0xff]  ;;  %v921_v16 = vld [vmem:[%s1341_s3 + $0x28] sm:$0xff] }
   0x6   :  { %191 = vmatpush.bf16.msra.mxu0 %v914_v1  ;;  %933 = vmatpush.bf16.msra.mxu3 %v914_v1  ;;  %v923_v14 = vld [vmem:[%s1341_s3 + $0x38] sm:$0xff]  ;;  %v922_v15 = vld [vmem:[%s1341_s3 + $0x30] sm:$0xff]  ;;  %v920_v17 = vld [vmem:[%s1341_s3 + $0x20] sm:$0xff] }
   0x7   :  { %402 = vmatpush.bf16.msra.mxu1 %v923_v14  ;;  %v904_v18 = vld [vmem:[%s1340_s0 + $0x20] sm:$0xff]  ;;  %v905_v19 = vld [vmem:[%s1340_s0 + $0x28] sm:$0xff]  ;;  %v919_v20 = vld [vmem:[%s1341_s3 + $0x18] sm:$0xff] }
   0x8   :  { %v918_v21 = vld [vmem:[%s1341_s3 + $0x10] sm:$0xff]  ;;  %v917_v22 = vld [vmem:[%s1341_s3 + $0x8] sm:$0xff]  ;;  %v916_v23 = vld [vmem:[%s1341_s3] sm:$0xff] }
   0x9   :  { %v1138_v25 = vld [vmem:[%s1339_s2] ss:$0 sm:$0xff] }
   0xa   :  { %192 = vmatpush.bf16.msra.mxu0 %v913_v2  ;;  %934 = vmatpush.bf16.msra.mxu3 %v913_v2 }
   0xb   :  { %403 = vmatpush.bf16.msra.mxu1 %v922_v15 }
   0xe   :  { %193 = vmatpush.bf16.msra.mxu0 %v912_v3  ;;  %935 = vmatpush.bf16.msra.mxu3 %v912_v3  ;;  %v931_v3 = vld [vmem:[%s1343_s5 + $0x38] sm:$0xff] }
   0xf   :  { %404 = vmatpush.bf16.msra.mxu1 %v921_v16  ;;  %543 = vmatpush.bf16.msra.mxu2 %v931_v3 }
  0x12   :  { %194 = vmatpush.bf16.msra.mxu0 %v911_v4  ;;  %936 = vmatpush.bf16.msra.mxu3 %v911_v4 }
  0x13   :  { %405 = vmatpush.bf16.msra.mxu1 %v920_v17 }
  0x16   :  { %195 = vmatpush.bf16.msra.mxu0 %v910_v5  ;;  %937 = vmatpush.bf16.msra.mxu3 %v910_v5  ;;  %v930_v5 = vld [vmem:[%s1343_s5 + $0x30] sm:$0xff] }
  0x17   :  { %406 = vmatpush.bf16.msra.mxu1 %v919_v20  ;;  %544 = vmatpush.bf16.msra.mxu2 %v930_v5 }
  0x1a   :  { %196 = vmatpush.bf16.msra.mxu0 %v909_v6  ;;  %938 = vmatpush.bf16.msra.mxu3 %v909_v6  ;;  %v929_v6 = vld [vmem:[%s1343_s5 + $0x28] sm:$0xff] }
  0x1b   :  { %407 = vmatpush.bf16.msra.mxu1 %v918_v21  ;;  %545 = vmatpush.bf16.msra.mxu2 %v929_v6 }
  0x1e   :  { %197 = vmatpush.bf16.msra.mxu0 %v908_v7  ;;  %939 = vmatpush.bf16.msra.mxu3 %v908_v7 }
  0x1f   :  { %408 = vmatpush.bf16.msra.mxu1 %v917_v22 }
  0x21   :  { %198 = vmatmul.bf16.vlgmr.msra.gmra.mxu0 %v900_v8  ;;  %228 = vmatmul.bf16.vlgmr.msra.gmra.mxu3 %v906_v9 }
  0x22   :  { %940 = vmatpush.bf16.msrb.mxu3 %v923_v14 }
  0x23   :  { %409 = vmatpush.bf16.msra.mxu1 %v916_v23 }
  0x26   :  { %941 = vmatpush.bf16.msrb.mxu3 %v922_v15 }
  0x2a   :  { %942 = vmatpush.bf16.msrb.mxu3 %v921_v16 }
  0x2e   :  { %943 = vmatpush.bf16.msrb.mxu3 %v920_v17 }
  0x31   :  { %203 = vmatmul.bf16.gmra.mxu0 %v901_v10  ;;  %233 = vmatmul.bf16.gmra.mxu3 %v907_v11  ;;  %v928_v10 = vld [vmem:[%s1343_s5 + $0x20] sm:$0xff] }
  0x32   :  { %944 = vmatpush.bf16.msrb.mxu3 %v919_v20  ;;  %546 = vmatpush.bf16.msra.mxu2 %v928_v10 }
  0x36   :  { %945 = vmatpush.bf16.msrb.mxu3 %v918_v21  ;;  %v927_v21 = vld [vmem:[%s1343_s5 + $0x18] sm:$0xff] }
  0x37   :  { %547 = vmatpush.bf16.msra.mxu2 %v927_v21 }
  0x3a   :  { %946 = vmatpush.bf16.msrb.mxu3 %v917_v22  ;;  %v926_v22 = vld [vmem:[%s1343_s5 + $0x10] sm:$0xff] }
  0x3b   :  { %548 = vmatpush.bf16.msra.mxu2 %v926_v22 }
  0x3e   :  { %947 = vmatpush.bf16.msrb.mxu3 %v916_v23  ;;  %v925_v23 = vld [vmem:[%s1343_s5 + $0x8] sm:$0xff] }
  0x3f   :  { %549 = vmatpush.bf16.msra.mxu2 %v925_v23 }
  0x41   :  { %208 = vmatmul.bf16.gmra.mxu0 %v902_v12 }
  0x42   :  { %948 = vmatpush.bf16.msra.mxu3 %v931_v3 }
  0x46   :  { %949 = vmatpush.bf16.msra.mxu3 %v930_v5 }
  0x4a   :  { %950 = vmatpush.bf16.msra.mxu3 %v929_v6 }
  0x4e   :  { %951 = vmatpush.bf16.msra.mxu3 %v928_v10 }
  0x51   :  { %213 = vmatmul.bf16.gmra.mxu0 %v903_v13 }
  0x52   :  { %952 = vmatpush.bf16.msra.mxu3 %v927_v21 }
  0x56   :  { %953 = vmatpush.bf16.msra.mxu3 %v926_v22 }
  0x5a   :  { %954 = vmatpush.bf16.msra.mxu3 %v925_v23 }
  0x61   :  { %218 = vmatmul.bf16.gmra.mxu0 %v904_v18 }
  0x71   :  { %223 = vmatmul.bf16.gmra.mxu0 %v905_v19 }
  0x9e   :  { %v199_v24 = vpop.f32.mrf.mxu0 }
  0x9f   :  { %v294_v27 = vadd.f32 %v1138_v25, %v199_v24  ;;  %v924_v24 = vld [vmem:[%s1343_s5] sm:$0xff] }
  0xa0   :  { %550 = vmatpush.bf16.msra.mxu2 %v924_v24  ;;  %955 = vmatpush.bf16.msra.mxu3 %v924_v24 }
  0xa1   :  { %v310_v30 = vmax.f32 %v294_v27, 0.0 }
  0xa4   :  { %v229_v26 = vpop.f32.mrf.mxu3 }
  0xa5   :  { %v306_v32 = vadd.f32 %v1138_v25, %v229_v26  ;;  %v957_v26 = vld [vmem:[%s1342_s4] ss:$0 sm:$0xff] }
  0xa6   :  { %v201_v28 = vpop.f32.mrf.mxu0 }
  0xa7   :  { %v295_v29 = vadd.f32 %v1138_v25, %v201_v28  ;;  %v322_v35 = vmax.f32 %v306_v32, 0.0 }
  0xa9   :  { %v311_v31 = vmax.f32 %v295_v29, 0.0 }
  0xab   :  { %v326_v33 = vpack.c.bf16 %v311_v31, %v310_v30 }
  0xac   :  { %v231_v34 = vpop.f32.mrf.mxu3 }
  0xad   :  { %410 = vmatmul.bf16.vlgmr.msra.gmra.mxu1 %v326_v33  ;;  %v307_v36 = vadd.f32 %v1138_v25, %v231_v34 }
  0xae   :  { %v204_v37 = vpop.f32.mrf.mxu0 }
  0xaf   :  { %v323_v38 = vmax.f32 %v307_v36, 0.0  ;;  %v296_v40 = vadd.f32 %v1138_v25, %v204_v37 }
  0xb1   :  { %v332_v39 = vpack.c.bf16 %v323_v38, %v322_v35  ;;  %v312_v44 = vmax.f32 %v296_v40, 0.0 }
  0xb3   :  { %440 = vmatmul.bf16.vlgmr.msrb.gmra.mxu3 %v332_v39 }
  0xb4   :  { %v234_v43 = vpop.f32.mrf.mxu3 }
  0xb5   :  { %v308_v47 = vadd.f32 %v1138_v25, %v234_v43 }
  0xb6   :  { %v206_v41 = vpop.f32.mrf.mxu0 }
  0xb7   :  { %v297_v42 = vadd.f32 %v1138_v25, %v206_v41  ;;  %v324_v50 = vmax.f32 %v308_v47, 0.0 }
  0xb9   :  { %v313_v45 = vmax.f32 %v297_v42, 0.0 }
  0xbb   :  { %v327_v46 = vpack.c.bf16 %v313_v45, %v312_v44 }
  0xbc   :  { %v236_v49 = vpop.f32.mrf.mxu3 }
  0xbd   :  { %415 = vmatmul.bf16.gmra.mxu1 %v327_v46  ;;  %v309_v51 = vadd.f32 %v1138_v25, %v236_v49 }
  0xbe   :  { %v209_v48 = vpop.f32.mrf.mxu0 }
  0xbf   :  { %v325_v52 = vmax.f32 %v309_v51, 0.0  ;;  %v298_v53 = vadd.f32 %v1138_v25, %v209_v48 }
  0xc1   :  { %v333_v54 = vpack.c.bf16 %v325_v52, %v324_v50  ;;  %v314_v57 = vmax.f32 %v298_v53, 0.0 }
  0xc3   :  { %445 = vmatmul.bf16.gmra.mxu3 %v333_v54 }
  0xc6   :  { %v211_v55 = vpop.f32.mrf.mxu0 }
  0xc7   :  { %v299_v56 = vadd.f32 %v1138_v25, %v211_v55 }
  0xc9   :  { %v315_v58 = vmax.f32 %v299_v56, 0.0 }
  0xcb   :  { %v328_v59 = vpack.c.bf16 %v315_v58, %v314_v57 }
  0xcd   :  { %420 = vmatmul.bf16.gmra.mxu1 %v328_v59 }
  0xce   :  { %v214_v60 = vpop.f32.mrf.mxu0 }
  0xcf   :  { %v300_v61 = vadd.f32 %v1138_v25, %v214_v60 }
  0xd1   :  { %v316_v0 = vmax.f32 %v300_v61, 0.0 }
  0xd6   :  { %v216_v62 = vpop.f32.mrf.mxu0 }
  0xd7   :  { %v301_v63 = vadd.f32 %v1138_v25, %v216_v62 }
  0xd9   :  { %v317_v1 = vmax.f32 %v301_v63, 0.0 }
  0xdb   :  { %v329_v2 = vpack.c.bf16 %v317_v1, %v316_v0 }
  0xdd   :  { %425 = vmatmul.bf16.gmra.mxu1 %v329_v2 }
  0xde   :  { %v219_v4 = vpop.f32.mrf.mxu0 }
  0xdf   :  { %v302_v7 = vadd.f32 %v1138_v25, %v219_v4 }
  0xe1   :  { %v318_v11 = vmax.f32 %v302_v7, 0.0 }
  0xe6   :  { %v221_v8 = vpop.f32.mrf.mxu0 }
  0xe7   :  { %v303_v9 = vadd.f32 %v1138_v25, %v221_v8 }
  0xe9   :  { %v319_v12 = vmax.f32 %v303_v9, 0.0 }
  0xeb   :  { %v330_v13 = vpack.c.bf16 %v319_v12, %v318_v11 }
  0xed   :  { %430 = vmatmul.bf16.gmra.mxu1 %v330_v13 }
  0xee   :  { %v224_v14 = vpop.f32.mrf.mxu0 }
  0xef   :  { %v304_v15 = vadd.f32 %v1138_v25, %v224_v14 }
  0xf1   :  { %v320_v18 = vmax.f32 %v304_v15, 0.0 }
  0xf6   :  { %v226_v16 = vpop.f32.mrf.mxu0 }
  0xf7   :  { %v305_v17 = vadd.f32 %v1138_v25, %v226_v16 }
  0xf9   :  { %v321_v19 = vmax.f32 %v305_v17, 0.0 }
  0xfb   :  { %v331_v20 = vpack.c.bf16 %v321_v19, %v320_v18  ;;  %v958_v18 = vld [vmem:[%s1344_s6] ss:$0 sm:$0xff] }
  0xfd   :  { %435 = vmatmul.bf16.gmra.mxu1 %v331_v20 }
 0x12a   :  { %v411_v25 = vpop.f32.mrf.mxu1 }
 0x12b   :  { %v412_v27 = vadd.f32 %v957_v26, %v411_v25 }
 0x12d   :  { %v451_v30 = vmax.f32 %v412_v27, 0.0 }
 0x132   :  { %v413_v28 = vpop.f32.mrf.mxu1 }
 0x133   :  { %v414_v29 = vadd.f32 %v957_v26, %v413_v28 }
 0x135   :  { %v452_v31 = vmax.f32 %v414_v29, 0.0 }
 0x136   :  { %v441_v32 = vpop.f32.mrf.mxu3 }
 0x137   :  { %v467_v33 = vpack.c.bf16 %v452_v31, %v451_v30  ;;  %v442_v35 = vadd.f32 %v957_v26, %v441_v32 }
 0x139   :  { %551 = vmatmul.bf16.vlgmr.msra.gmra.mxu2 %v467_v33  ;;  %v463_v37 = vmax.f32 %v442_v35, 0.0 }
 0x13a   :  { %v416_v34 = vpop.f32.mrf.mxu1 }
 0x13b   :  { %v417_v39 = vadd.f32 %v957_v26, %v416_v34 }
 0x13d   :  { %v453_v44 = vmax.f32 %v417_v39, 0.0 }
 0x13e   :  { %v443_v36 = vpop.f32.mrf.mxu3 }
 0x13f   :  { %v444_v38 = vadd.f32 %v957_v26, %v443_v36 }
 0x141   :  { %v464_v40 = vmax.f32 %v444_v38, 0.0 }
 0x142   :  { %v418_v41 = vpop.f32.mrf.mxu1 }
 0x143   :  { %v419_v42 = vadd.f32 %v957_v26, %v418_v41  ;;  %v473_v43 = vpack.c.bf16 %v464_v40, %v463_v37 }
 0x145   :  { %v454_v45 = vmax.f32 %v419_v42, 0.0  ;;  %581 = vmatmul.bf16.vlgmr.msra.gmra.mxu3 %v473_v43 }
 0x146   :  { %v446_v48 = vpop.f32.mrf.mxu3 }
 0x147   :  { %v468_v46 = vpack.c.bf16 %v454_v45, %v453_v44  ;;  %v447_v49 = vadd.f32 %v957_v26, %v446_v48 }
 0x149   :  { %556 = vmatmul.bf16.gmra.mxu2 %v468_v46  ;;  %v465_v54 = vmax.f32 %v447_v49, 0.0 }
 0x14a   :  { %v421_v47 = vpop.f32.mrf.mxu1 }
 0x14b   :  { %v422_v50 = vadd.f32 %v957_v26, %v421_v47 }
 0x14d   :  { %v455_v56 = vmax.f32 %v422_v50, 0.0 }
 0x14e   :  { %v448_v52 = vpop.f32.mrf.mxu3 }
 0x14f   :  { %v449_v55 = vadd.f32 %v957_v26, %v448_v52 }
 0x151   :  { %v466_v58 = vmax.f32 %v449_v55, 0.0 }
 0x152   :  { %v423_v51 = vpop.f32.mrf.mxu1 }
 0x153   :  { %v424_v53 = vadd.f32 %v957_v26, %v423_v51  ;;  %v474_v60 = vpack.c.bf16 %v466_v58, %v465_v54 }
 0x155   :  { %v456_v57 = vmax.f32 %v424_v53, 0.0  ;;  %586 = vmatmul.bf16.gmra.mxu3 %v474_v60 }
 0x157   :  { %v469_v59 = vpack.c.bf16 %v456_v57, %v455_v56 }
 0x159   :  { %561 = vmatmul.bf16.gmra.mxu2 %v469_v59 }
 0x15a   :  { %v426_v61 = vpop.f32.mrf.mxu1 }
 0x15b   :  { %v427_v62 = vadd.f32 %v957_v26, %v426_v61 }
 0x15d   :  { %v457_v1 = vmax.f32 %v427_v62, 0.0 }
 0x162   :  { %v428_v63 = vpop.f32.mrf.mxu1 }
 0x163   :  { %v429_v0 = vadd.f32 %v957_v26, %v428_v63 }
 0x165   :  { %v458_v2 = vmax.f32 %v429_v0, 0.0 }
 0x167   :  { %v470_v3 = vpack.c.bf16 %v458_v2, %v457_v1 }
 0x169   :  { %566 = vmatmul.bf16.gmra.mxu2 %v470_v3 }
 0x16a   :  { %v431_v4 = vpop.f32.mrf.mxu1 }
 0x16b   :  { %v432_v5 = vadd.f32 %v957_v26, %v431_v4 }
 0x16d   :  { %v459_v8 = vmax.f32 %v432_v5, 0.0 }
 0x172   :  { %v433_v6 = vpop.f32.mrf.mxu1 }
 0x173   :  { %v434_v7 = vadd.f32 %v957_v26, %v433_v6 }
 0x175   :  { %v460_v9 = vmax.f32 %v434_v7, 0.0 }
 0x177   :  { %v471_v10 = vpack.c.bf16 %v460_v9, %v459_v8 }
 0x179   :  { %571 = vmatmul.bf16.gmra.mxu2 %v471_v10 }
 0x17a   :  { %v436_v11 = vpop.f32.mrf.mxu1 }
 0x17b   :  { %v437_v12 = vadd.f32 %v957_v26, %v436_v11 }
 0x17d   :  { %v461_v15 = vmax.f32 %v437_v12, 0.0 }
 0x182   :  { %v438_v13 = vpop.f32.mrf.mxu1 }
 0x183   :  { %v439_v14 = vadd.f32 %v957_v26, %v438_v13 }
 0x185   :  { %v462_v16 = vmax.f32 %v439_v14, 0.0 }
 0x187   :  { %v472_v17 = vpack.c.bf16 %v462_v16, %v461_v15 }
 0x189   :  { %576 = vmatmul.bf16.gmra.mxu2 %v472_v17 }
 0x1bc   :  { %v552_v19 = vpop.f32.mrf.mxu2 }
 0x1bd   :  { %v553_v20 = vadd.f32 %v958_v18, %v552_v19 }
 0x1bf   :  { %592 = vmax.xlane.f32.xlu0 %v553_v20 }
 0x1c4   :  { %v554_v21 = vpop.f32.mrf.mxu2 }
 0x1c5   :  { %v555_v22 = vadd.f32 %v958_v18, %v554_v21 }
 0x1c7   :  { %594 = vmax.xlane.f32.xlu0 %v555_v22 }
 0x1c8   :  { %v582_v23 = vpop.f32.mrf.mxu3 }
 0x1c9   :  { %v583_v24 = vadd.f32 %v958_v18, %v582_v23 }
 0x1cc   :  { %v557_v25 = vpop.f32.mrf.mxu2 }
 0x1cd   :  { %v558_v27 = vadd.f32 %v958_v18, %v557_v25 }
 0x1cf   :  { %616 = vmax.xlane.f32.xlu0 %v583_v24  ;;  %596 = vmax.xlane.f32.xlu1 %v558_v27 }
 0x1d0   :  { %v584_v37 = vpop.f32.mrf.mxu3 }
 0x1d1   :  { %v1207_v48 = vadd.f32 %v958_v18, %v584_v37 }
 0x1d4   :  { %v559_v26 = vpop.f32.mrf.mxu2 }
 0x1d5   :  { %v560_v28 = vadd.f32 %v958_v18, %v559_v26 }
 0x1d7   :  { %598 = vmax.xlane.f32.xlu1 %v560_v28 }
 0x1d8   :  { %v587_v40 = vpop.f32.mrf.mxu3 }
 0x1d9   :  { %v1213_v50 = vadd.f32 %v958_v18, %v587_v40 }
 0x1dc   :  { %v562_v29 = vpop.f32.mrf.mxu2 }
 0x1dd   :  { %v563_v30 = vadd.f32 %v958_v18, %v562_v29 }
 0x1df   :  { %600 = vmax.xlane.f32.xlu2 %v563_v30 }
 0x1e0   :  { %v589_v43 = vpop.f32.mrf.mxu3 }
 0x1e1   :  { %v1201_v45 = vadd.f32 %v958_v18, %v589_v43 }
 0x1e4   :  { %v564_v31 = vpop.f32.mrf.mxu2 }
 0x1e5   :  { %v1186_v32 = vadd.f32 %v958_v18, %v564_v31 }
 0x1e7   :  { %602 = vmax.xlane.f32.xlu2 %v1186_v32 }
 0x1ec   :  { %v567_v33 = vpop.f32.mrf.mxu2 }
 0x1ed   :  { %v1189_v34 = vadd.f32 %v958_v18, %v567_v33 }
 0x1ef   :  { %604 = vmax.xlane.f32.xlu0 %v1189_v34 }
 0x1f4   :  { %v569_v35 = vpop.f32.mrf.mxu2 }
 0x1f5   :  { %v1192_v36 = vadd.f32 %v958_v18, %v569_v35 }
 0x1f7   :  { %606 = vmax.xlane.f32.xlu1 %v1192_v36 }
 0x1fc   :  { %v572_v38 = vpop.f32.mrf.mxu2 }
 0x1fd   :  { %v1195_v39 = vadd.f32 %v958_v18, %v572_v38 }
 0x1ff   :  { %608 = vmax.xlane.f32.xlu2 %v1195_v39 }
 0x204   :  { %v574_v41 = vpop.f32.mrf.mxu2 }
 0x205   :  { %v1198_v42 = vadd.f32 %v958_v18, %v574_v41 }
 0x207   :  { %610 = vmax.xlane.f32.xlu0 %v1198_v42 }
 0x20c   :  { %v577_v44 = vpop.f32.mrf.mxu2 }
 0x20d   :  { %v1203_v46 = vadd.f32 %v958_v18, %v577_v44 }
 0x20f   :  { %622 = vmax.xlane.f32.xlu0 %v1201_v45  ;;  %612 = vmax.xlane.f32.xlu1 %v1203_v46 }
 0x214   :  { %v579_v47 = vpop.f32.mrf.mxu2 }
 0x215   :  { %v1209_v49 = vadd.f32 %v958_v18, %v579_v47 }
 0x217   :  { %614 = vmax.xlane.f32.xlu2 %v1209_v49  ;;  %618 = vmax.xlane.f32.xlu1 %v1207_v48 }
 0x21f   :  { %620 = vmax.xlane.f32.xlu2 %v1213_v50 }
 0x232   :  { %v593_v51 = vpop.xlane.xlu0 %592 }
 0x233   :  { %v1216_v52 = vsub.f32 %v553_v20, %v593_v51 }
 0x235   :  { %v640_v53 = vmul.f32 1.442695, %v1216_v52 }
 0x237   :  { %959 = vpow2.f32 %v640_v53 }
 0x23a   :  { %v595_v54 = vpop.xlane.xlu0 %594 }
 0x23b   :  { %v1219_v55 = vsub.f32 %v555_v22, %v595_v54 }
 0x23d   :  { %v960_v56 = vpop.eup %959  ;;  %v642_v57 = vmul.f32 1.442695, %v1219_v55 }
 0x23e   :  { %672 = vadd.xlane.f32.xlu1 %v960_v56 }
 0x23f   :  { %961 = vpow2.f32 %v642_v57 }
 0x242   :  { %v617_v58 = vpop.xlane.xlu0 %616  ;;  %v597_v59 = vpop.xlane.xlu1 %596 }
 0x243   :  { %v1222_v60 = vsub.f32 %v583_v24, %v617_v58  ;;  %v1224_v61 = vsub.f32 %v558_v27, %v597_v59 }
 0x245   :  { %v962_v62 = vpop.eup %961  ;;  %v664_v63 = vmul.f32 1.442695, %v1222_v60  ;;  %v644_v0 = vmul.f32 1.442695, %v1224_v61 }
 0x246   :  { %674 = vadd.xlane.f32.xlu2 %v962_v62 }
 0x247   :  { %963 = vpow2.f32 %v664_v63 }
 0x248   :  { %965 = vpow2.f32 %v644_v0 }
 0x24a   :  { %v599_v1 = vpop.xlane.xlu1 %598 }
 0x24b   :  { %v1228_v2 = vsub.f32 %v560_v28, %v599_v1 }
 0x24d   :  { %v964_v3 = vpop.eup %963  ;;  %v646_v4 = vmul.f32 1.442695, %v1228_v2 }
 0x24e   :  { %v966_v5 = vpop.eup %965  ;;  %696 = vadd.xlane.f32.xlu1 %v964_v3 }
 0x24f   :  { %967 = vpow2.f32 %v646_v4  ;;  %676 = vadd.xlane.f32.xlu0 %v966_v5 }
 0x252   :  { %v601_v6 = vpop.xlane.xlu2 %600 }
 0x253   :  { %v1231_v7 = vsub.f32 %v563_v30, %v601_v6 }
 0x255   :  { %v968_v8 = vpop.eup %967  ;;  %v648_v9 = vmul.f32 1.442695, %v1231_v7 }
 0x256   :  { %678 = vadd.xlane.f32.xlu1 %v968_v8 }
 0x257   :  { %969 = vpow2.f32 %v648_v9 }
 0x25a   :  { %v603_v10 = vpop.xlane.xlu2 %602 }
 0x25b   :  { %v1235_v11 = vsub.f32 %v1186_v32, %v603_v10 }
 0x25d   :  { %v970_v12 = vpop.eup %969  ;;  %v650_v13 = vmul.f32 1.442695, %v1235_v11 }
 0x25e   :  { %680 = vadd.xlane.f32.xlu2 %v970_v12 }
 0x25f   :  { %971 = vpow2.f32 %v650_v13 }
 0x262   :  { %v605_v14 = vpop.xlane.xlu0 %604 }
 0x263   :  { %v1239_v15 = vsub.f32 %v1189_v34, %v605_v14 }
 0x265   :  { %v972_v16 = vpop.eup %971  ;;  %v652_v17 = vmul.f32 1.442695, %v1239_v15 }
 0x266   :  { %682 = vadd.xlane.f32.xlu0 %v972_v16 }
 0x267   :  { %973 = vpow2.f32 %v652_v17 }
 0x26a   :  { %v607_v18 = vpop.xlane.xlu1 %606 }
 0x26b   :  { %v1243_v19 = vsub.f32 %v1192_v36, %v607_v18 }
 0x26d   :  { %v974_v20 = vpop.eup %973  ;;  %v654_v21 = vmul.f32 1.442695, %v1243_v19 }
 0x26e   :  { %684 = vadd.xlane.f32.xlu1 %v974_v20 }
 0x26f   :  { %975 = vpow2.f32 %v654_v21 }
 0x272   :  { %v609_v22 = vpop.xlane.xlu2 %608 }
 0x273   :  { %v1247_v23 = vsub.f32 %v1195_v39, %v609_v22 }
 0x275   :  { %v976_v24 = vpop.eup %975  ;;  %v656_v25 = vmul.f32 1.442695, %v1247_v23 }
 0x276   :  { %686 = vadd.xlane.f32.xlu2 %v976_v24 }
 0x277   :  { %977 = vpow2.f32 %v656_v25 }
 0x27a   :  { %v611_v27 = vpop.xlane.xlu0 %610 }
 0x27b   :  { %v1251_v26 = vsub.f32 %v1198_v42, %v611_v27 }
 0x27d   :  { %v978_v28 = vpop.eup %977  ;;  %v658_v29 = vmul.f32 1.442695, %v1251_v26 }
 0x27e   :  { %688 = vadd.xlane.f32.xlu0 %v978_v28 }
 0x27f   :  { %979 = vpow2.f32 %v658_v29 }
 0x282   :  { %v623_v30 = vpop.xlane.xlu0 %622  ;;  %v613_v31 = vpop.xlane.xlu1 %612 }
 0x283   :  { %v1255_v32 = vsub.f32 %v1201_v45, %v623_v30  ;;  %v1258_v33 = vsub.f32 %v1203_v46, %v613_v31 }
 0x285   :  { %v980_v34 = vpop.eup %979  ;;  %v670_v35 = vmul.f32 1.442695, %v1255_v32  ;;  %v660_v36 = vmul.f32 1.442695, %v1258_v33 }
 0x286   :  { %690 = vadd.xlane.f32.xlu1 %v980_v34 }
 0x287   :  { %981 = vpow2.f32 %v670_v35 }
 0x288   :  { %983 = vpow2.f32 %v660_v36 }
 0x28a   :  { %v615_v37 = vpop.xlane.xlu2 %614  ;;  %v619_v38 = vpop.xlane.xlu1 %618 }
 0x28b   :  { %v1263_v39 = vsub.f32 %v1209_v49, %v615_v37  ;;  %v1266_v40 = vsub.f32 %v1207_v48, %v619_v38 }
 0x28d   :  { %v982_v41 = vpop.eup %981  ;;  %v662_v42 = vmul.f32 1.442695, %v1263_v39  ;;  %v666_v43 = vmul.f32 1.442695, %v1266_v40 }
 0x28e   :  { %v984_v44 = vpop.eup %983  ;;  %702 = vadd.xlane.f32.xlu1 %v982_v41 }
 0x28f   :  { %985 = vpow2.f32 %v662_v42  ;;  %692 = vadd.xlane.f32.xlu2 %v984_v44 }
 0x290   :  { %987 = vpow2.f32 %v666_v43 }
 0x292   :  { %v621_v45 = vpop.xlane.xlu2 %620 }
 0x293   :  { %v1271_v46 = vsub.f32 %v1213_v50, %v621_v45 }
 0x295   :  { %v986_v47 = vpop.eup %985  ;;  %v668_v49 = vmul.f32 1.442695, %v1271_v46 }
 0x296   :  { %v988_v51 = vpop.eup %987  ;;  %694 = vadd.xlane.f32.xlu0 %v986_v47 }
 0x297   :  { %989 = vpow2.f32 %v668_v49  ;;  %698 = vadd.xlane.f32.xlu2 %v988_v51 }
 0x29d   :  { %v990_v48 = vpop.eup %989 }
 0x29e   :  { %700 = vadd.xlane.f32.xlu0 %v990_v48 }
 0x2b1   :  { %v673_v53 = vpop.xlane.xlu1 %672 }
 0x2b2   :  { %991 = vlog2.f32 %v673_v53 }
 0x2b8   :  { %v992_v54 = vpop.eup %991 }
 0x2b9   :  { %v705_v56 = vmul.f32 0.6931472, %v992_v54  ;;  %v675_v57 = vpop.xlane.xlu2 %674 }
 0x2ba   :  { %993 = vlog2.f32 %v675_v57 }
 0x2bb   :  { %v736_v58 = vsub.f32 %v1216_v52, %v705_v56 }
 0x2bd   :  { %752 = vst [vmem:[%s1345_s7] sm:$0xff] %v736_v58 }
 0x2c0   :  { %v994_v50 = vpop.eup %993 }
 0x2c1   :  { %v707_v59 = vmul.f32 0.6931472, %v994_v50  ;;  %v697_v62 = vpop.xlane.xlu1 %696 }
 0x2c2   :  { %v677_v63 = vpop.xlane.xlu0 %676  ;;  %995 = vlog2.f32 %v697_v62 }
 0x2c3   :  { %v737_v0 = vsub.f32 %v1219_v55, %v707_v59  ;;  %997 = vlog2.f32 %v677_v63 }
 0x2c5   :  { %753 = vst [vmem:[%s1345_s7 + $0x8] sm:$0xff] %v737_v0 }
 0x2c8   :  { %v996_v1 = vpop.eup %995 }
 0x2c9   :  { %v998_v3 = vpop.eup %997  ;;  %v729_v4 = vmul.f32 0.6931472, %v996_v1  ;;  %v679_v52 = vpop.xlane.xlu1 %678 }
 0x2ca   :  { %v709_v5 = vmul.f32 0.6931472, %v998_v3  ;;  %999 = vlog2.f32 %v679_v52 }
 0x2cb   :  { %v748_v6 = vsub.f32 %v1222_v60, %v729_v4 }
 0x2cc   :  { %v738_v8 = vsub.f32 %v1224_v61, %v709_v5 }
 0x2cd   :  { %764 = vst [vmem:[%s1345_s7 + $0x60] sm:$0xff] %v748_v6 }
 0x2ce   :  { %754 = vst [vmem:[%s1345_s7 + $0x10] sm:$0xff] %v738_v8 }
 0x2d0   :  { %v1000_v55 = vpop.eup %999 }
 0x2d1   :  { %v711_v9 = vmul.f32 0.6931472, %v1000_v55  ;;  %v681_v10 = vpop.xlane.xlu2 %680 }
 0x2d2   :  { %1001 = vlog2.f32 %v681_v10 }
 0x2d3   :  { %v739_v12 = vsub.f32 %v1228_v2, %v711_v9 }
 0x2d5   :  { %755 = vst [vmem:[%s1345_s7 + $0x18] sm:$0xff] %v739_v12 }
 0x2d8   :  { %v1002_v60 = vpop.eup %1001 }
 0x2d9   :  { %v713_v61 = vmul.f32 0.6931472, %v1002_v60  ;;  %v683_v13 = vpop.xlane.xlu0 %682 }
 0x2da   :  { %1003 = vlog2.f32 %v683_v13 }
 0x2db   :  { %v740_v14 = vsub.f32 %v1231_v7, %v713_v61 }
 0x2dd   :  { %756 = vst [vmem:[%s1345_s7 + $0x20] sm:$0xff] %v740_v14 }
 0x2e0   :  { %v1004_v16 = vpop.eup %1003 }
 0x2e1   :  { %v715_v17 = vmul.f32 0.6931472, %v1004_v16  ;;  %v685_v18 = vpop.xlane.xlu1 %684 }
 0x2e2   :  { %1005 = vlog2.f32 %v685_v18 }
 0x2e3   :  { %v741_v2 = vsub.f32 %v1235_v11, %v715_v17 }
 0x2e5   :  { %757 = vst [vmem:[%s1345_s7 + $0x28] sm:$0xff] %v741_v2 }
 0x2e8   :  { %v1006_v20 = vpop.eup %1005 }
 0x2e9   :  { %v717_v21 = vmul.f32 0.6931472, %v1006_v20  ;;  %v687_v22 = vpop.xlane.xlu2 %686 }
 0x2ea   :  { %1007 = vlog2.f32 %v687_v22 }
 0x2eb   :  { %v742_v7 = vsub.f32 %v1239_v15, %v717_v21 }
 0x2ed   :  { %758 = vst [vmem:[%s1345_s7 + $0x30] sm:$0xff] %v742_v7 }
 0x2f0   :  { %v1008_v24 = vpop.eup %1007 }
 0x2f1   :  { %v719_v25 = vmul.f32 0.6931472, %v1008_v24  ;;  %v689_v27 = vpop.xlane.xlu0 %688 }
 0x2f2   :  { %1009 = vlog2.f32 %v689_v27 }
 0x2f3   :  { %v743_v11 = vsub.f32 %v1243_v19, %v719_v25 }
 0x2f5   :  { %759 = vst [vmem:[%s1345_s7 + $0x38] sm:$0xff] %v743_v11 }
 0x2f8   :  { %v1010_v28 = vpop.eup %1009 }
 0x2f9   :  { %v721_v29 = vmul.f32 0.6931472, %v1010_v28  ;;  %v691_v30 = vpop.xlane.xlu1 %690 }
 0x2fa   :  { %1011 = vlog2.f32 %v691_v30 }
 0x2fb   :  { %v744_v15 = vsub.f32 %v1247_v23, %v721_v29 }
 0x2fd   :  { %760 = vst [vmem:[%s1345_s7 + $0x40] sm:$0xff] %v744_v15 }
 0x300   :  { %v1012_v31 = vpop.eup %1011 }
 0x301   :  { %v723_v34 = vmul.f32 0.6931472, %v1012_v31  ;;  %v703_v35 = vpop.xlane.xlu1 %702 }
 0x302   :  { %v693_v36 = vpop.xlane.xlu2 %692  ;;  %1013 = vlog2.f32 %v703_v35 }
 0x303   :  { %v745_v19 = vsub.f32 %v1251_v26, %v723_v34  ;;  %1015 = vlog2.f32 %v693_v36 }
 0x305   :  { %761 = vst [vmem:[%s1345_s7 + $0x48] sm:$0xff] %v745_v19 }
 0x308   :  { %v1014_v37 = vpop.eup %1013 }
 0x309   :  { %v1016_v38 = vpop.eup %1015  ;;  %v735_v41 = vmul.f32 0.6931472, %v1014_v37  ;;  %v695_v23 = vpop.xlane.xlu0 %694 }
 0x30a   :  { %v725_v42 = vmul.f32 0.6931472, %v1016_v38  ;;  %1017 = vlog2.f32 %v695_v23  ;;  %v699_v43 = vpop.xlane.xlu2 %698 }
 0x30b   :  { %v751_v44 = vsub.f32 %v1255_v32, %v735_v41  ;;  %1019 = vlog2.f32 %v699_v43 }
 0x30c   :  { %v746_v45 = vsub.f32 %v1258_v33, %v725_v42 }
 0x30d   :  { %767 = vst [vmem:[%s1345_s7 + $0x78] sm:$0xff] %v751_v44 }
 0x30e   :  { %762 = vst [vmem:[%s1345_s7 + $0x50] sm:$0xff] %v746_v45 }
 0x310   :  { %v1018_v26 = vpop.eup %1017 }
 0x311   :  { %v1020_v47 = vpop.eup %1019  ;;  %v727_v49 = vmul.f32 0.6931472, %v1018_v26  ;;  %v701_v51 = vpop.xlane.xlu0 %700 }
 0x312   :  { %v731_v48 = vmul.f32 0.6931472, %v1020_v47  ;;  %1021 = vlog2.f32 %v701_v51 }
 0x313   :  { %v747_v53 = vsub.f32 %v1263_v39, %v727_v49 }
 0x314   :  { %v749_v32 = vsub.f32 %v1266_v40, %v731_v48 }
 0x315   :  { %763 = vst [vmem:[%s1345_s7 + $0x58] sm:$0xff] %v747_v53 }
 0x316   :  { %765 = vst [vmem:[%s1345_s7 + $0x68] sm:$0xff] %v749_v32 }
 0x318   :  { %v1022_v33 = vpop.eup %1021 }
 0x319   :  { %v733_v54 = vmul.f32 0.6931472, %v1022_v33 }
 0x31b   :  { %v750_v56 = vsub.f32 %v1271_v46, %v733_v54 }
 0x31d   :  { %766 = vst [vmem:[%s1345_s7 + $0x70] sm:$0xff] %v750_v56 }

</bundles_post_ra>
